<compile_context>
chip_gen: v6e
topology: v6e:2x2x1
jax: 0.10.0
libtpu: 0.0.40
codegen_flags: <defaults>
</compile_context>

<pallas_src>
import jax
import jax.numpy as jnp
from jax import lax
from jax.experimental import pallas as pl
from jax.experimental.pallas import tpu as pltpu


LANE = 128


def _round_up(n, m):
    return ((n + m - 1) // m) * m


def _pad_to(a, axis, new_size):
    pad = [(0, 0)] * a.ndim
    pad[axis] = (0, new_size - a.shape[axis])
    return jnp.pad(a, pad)


# ----------------------------------------------------------------------------
# Fused kernel: bulk input projection + LSTM recurrence + last-step gather +
# final linear mapping.  Grid: one step per batch tile ("parallel" -> shardable
# across TensorCores on megacore parts).
# ----------------------------------------------------------------------------
def _embedding_fwd_kernel(x_ref, lens_ref, wi_ref, wh_ref, b_ref, wm_ref, bm_ref,
                          o_ref, xg_ref):
    bt = lens_ref.shape[0]           # batch tile (sublane-aligned, 8)
    T = x_ref.shape[0] // bt         # timesteps
    Hp = wh_ref.shape[0]             # lane-padded hidden size

    # ---- Phase 1: bulk input projection — one big MXU matmul, no recurrence ----
    # x_ref rows are time-major within the tile: row t*bt + b == (time t, batch b).
    xg_ref[...] = (jnp.dot(x_ref[...], wi_ref[...],
                           preferred_element_type=jnp.float32)
                   + b_ref[...])     # (T*bt, 4Hp), bias folded in once

    wh = wh_ref[...]                 # (Hp, 4Hp) fused gate weights (i,f,o,g order)
    # Index of last valid timestep per row (lens == 0 is not a valid input; the
    # original module would also misbehave there).
    last_t = lens_ref[...] - 1       # (bt, 1) int32

    # ---- Phase 2: serial recurrence — single matmul (h @ wh) per step ----
    def step(t, carry):
        h, c, last = carry
        row = pl.multiple_of(t * bt, bt)                  # sublane-aligned start
        gates = (xg_ref[pl.ds(row, bt), :]                # (bt, 4Hp) precomputed
                 + jnp.dot(h, wh, preferred_element_type=jnp.float32))
        # Nonlinearities over contiguous lane-aligned slabs: sigmoid on i|f|o,
        # tanh on g (zero-padded gate columns stay harmless: sigmoid(0)*0 etc.).
        ifo = jax.nn.sigmoid(gates[:, :3 * Hp])
        g_g = jnp.tanh(gates[:, 3 * Hp:])
        i_g = ifo[:, 0 * Hp:1 * Hp]
        f_g = ifo[:, 1 * Hp:2 * Hp]
        o_g = ifo[:, 2 * Hp:3 * Hp]
        c_new = f_g * c + i_g * g_g
        h_new = o_g * jnp.tanh(c_new)
        # Fused "gather at lens-1": latch h at the row's last valid timestep.
        last_new = jnp.where(last_t == t, h_new, last)
        return h_new, c_new, last_new

    zeros = jnp.zeros((bt, Hp), jnp.float32)
    unroll = True if T <= 32 else 8
    _, _, last = lax.fori_loop(0, T, step, (zeros, zeros, zeros), unroll=unroll)

    # ---- Phase 3: fused final Linear -> lane-dense (bt, Op) store ----
    o_ref[...] = (jnp.dot(last, wm_ref[...], preferred_element_type=jnp.float32)
                  + bm_ref[...])


# ----------------------------------------------------------------------------
# Wrapper: pads batch, rearranges x time-major per batch tile, launches the
# single fused kernel, slices padding off.
# ----------------------------------------------------------------------------
def embedding_model_forward(params, x, lens, *, batch_tile=8):
    """x: (B, T, D) float32, lens: (B,) int -> (B, output_size) float32."""
    B, T, D = x.shape
    Hp = params["wh"].shape[0]
    Op = params["w_map"].shape[1]
    O = params["output_size"]

    Bp = _round_up(B, batch_tile)
    nb = Bp // batch_tile

    x_p = _pad_to(x.astype(jnp.float32), 0, Bp)                    # (Bp, T, D)
    # Time-major within each batch tile so every timestep's rows are contiguous:
    # (nb, bt, T, D) -> (nb, T, bt, D) -> (nb*T*bt, D).  One-time XLA layout op
    # on the smallest tensor; keeps the kernel free of reshapes / strided loads.
    x_tm = (x_p.reshape(nb, batch_tile, T, D)
                .transpose(0, 2, 1, 3)
                .reshape(nb * T * batch_tile, D))

    lens_col = lens.astype(jnp.int32).reshape(B, 1)
    lens_p = jnp.pad(lens_col, ((0, Bp - B), (0, 0)), constant_values=1)

    y_p = pl.pallas_call(
        _embedding_fwd_kernel,
        out_shape=jax.ShapeDtypeStruct((Bp, Op), jnp.float32),
        grid=(nb,),
        in_specs=[
            pl.BlockSpec((T * batch_tile, D), lambda i: (i, 0)),   # x (time-major per tile)
            pl.BlockSpec((batch_tile, 1), lambda i: (i, 0)),       # lens
            pl.BlockSpec((D, 4 * Hp), lambda i: (0, 0)),           # wi (i,f,o,g fused)
            pl.BlockSpec((Hp, 4 * Hp), lambda i: (0, 0)),          # wh
            pl.BlockSpec((1, 4 * Hp), lambda i: (0, 0)),           # bias (b_ih + b_hh)
            pl.BlockSpec((Hp, Op), lambda i: (0, 0)),              # w_map
            pl.BlockSpec((1, Op), lambda i: (0, 0)),               # b_map
        ],
        out_specs=pl.BlockSpec((batch_tile, Op), lambda i: (i, 0)),
        scratch_shapes=[pltpu.VMEM((T * batch_tile, 4 * Hp), jnp.float32)],
        compiler_params=pltpu.CompilerParams(
            dimension_semantics=("parallel",)),
    )(x_tm, lens_p, params["wi"], params["wh"], params["b"],
      params["w_map"], params["b_map"])

    return y_p[:B, :O]


# ----------------------------------------------------------------------------
# Parameter init (PyTorch-style layout) + repack into the fused kernel layout.
# ----------------------------------------------------------------------------
def init_raw_params(key, input_size, hidden_size, output_size):
    """PyTorch-style uniform init; torch.nn.LSTM / Linear layouts."""
    k1, k2, k3, k4, k5, k6 = jax.random.split(key, 6)
    H = hidden_size
    bound = 1.0 / jnp.sqrt(H)
    u = lambda k, shape: jax.random.uniform(k, shape, minval=-bound, maxval=bound,
                                            dtype=jnp.float32)
    return {
        "w_ih": u(k1, (4 * H, input_size)),
        "w_hh": u(k2, (4 * H, H)),
        "b_ih": u(k3, (4 * H,)),
        "b_hh": u(k4, (4 * H,)),
        "w_map": u(k5, (output_size, H)),
        "b_map": u(k6, (output_size,)),
    }


def prepare_params(raw, hidden_size, output_size):
    """Repack torch-layout params into the fused, lane-padded kernel layout.

    Gates are re-packed from PyTorch's (i, f, g, o) order into (i, f, o, g) so
    the three sigmoid gates form one contiguous lane-aligned slice.  H and O are
    zero-padded to multiples of 128; padded hidden/cell units stay exactly 0
    through the recurrence and contribute nothing to the output.
    """
    H, O = hidden_size, output_size
    D = raw["w_ih"].shape[1]
    Hp = _round_up(H, LANE)
    Op = _round_up(O, LANE)
    order = (0, 1, 3, 2)   # i, f, o, g

    wi_g = jnp.transpose(raw["w_ih"].reshape(4, H, D), (0, 2, 1))        # (4, D, H)
    wh_g = jnp.transpose(raw["w_hh"].reshape(4, H, H), (0, 2, 1))        # (4, H, H)
    b_g = (raw["b_ih"] + raw["b_hh"]).reshape(4, H)                      # (4, H)

    wi_g = _pad_to(wi_g, 2, Hp)                                          # (4, D, Hp)
    wh_g = _pad_to(_pad_to(wh_g, 2, Hp), 1, Hp)                          # (4, Hp, Hp)
    b_g = _pad_to(b_g, 1, Hp)                                            # (4, Hp)

    wi = jnp.concatenate([wi_g[k] for k in order], axis=1)               # (D, 4Hp)
    wh = jnp.concatenate([wh_g[k] for k in order], axis=1)               # (Hp, 4Hp)
    bias = jnp.concatenate([b_g[k] for k in order], axis=0).reshape(1, 4 * Hp)

    w_map = _pad_to(_pad_to(raw["w_map"].T, 0, Hp), 1, Op)               # (Hp, Op)
    b_map = _pad_to(raw["b_map"], 0, Op).reshape(1, Op)                  # (1, Op)

    return {"wi": wi, "wh": wh, "b": bias, "w_map": w_map, "b_map": b_map,
            "output_size": O}


# ----------------------------------------------------------------------------
# Pure-JAX reference mirroring torch.nn.LSTM + last-step gather + Linear.
# ----------------------------------------------------------------------------
def reference_forward(raw, x, lens, hidden_size):
    B, T, _ = x.shape
    H = hidden_size
    h = jnp.zeros((B, H), jnp.float32)
    c = jnp.zeros((B, H), jnp.float32)
    outs = []
    for t in range(T):
        gates = (x[:, t, :] @ raw["w_ih"].T + raw["b_ih"]
                 + h @ raw["w_hh"].T + raw["b_hh"])
        i_g = jax.nn.sigmoid(gates[:, 0:H])
        f_g = jax.nn.sigmoid(gates[:, H:2 * H])
        g_g = jnp.tanh(gates[:, 2 * H:3 * H])
        o_g = jax.nn.sigmoid(gates[:, 3 * H:4 * H])
        c = f_g * c + i_g * g_g
        h = o_g * jnp.tanh(c)
        outs.append(h)
    out = jnp.stack(outs, axis=1)                       # (B, T, H)
    idx = (lens - 1).astype(jnp.int32)
    last = out[jnp.arange(B), idx, :]
    return last @ raw["w_map"].T + raw["b_map"]


if __name__ == "__main__":
    # Small shapes consistent with the module's forward (batch_first sequences).
    B, T = 2, 8
    INPUT_SIZE, HIDDEN_SIZE, OUTPUT_SIZE = 16, 32, 24

    key = jax.random.PRNGKey(0)
    kx, kp = jax.random.split(key)
    x = jax.random.normal(kx, (B, T, INPUT_SIZE), dtype=jnp.float32)
    lens = jnp.array([T, 5], dtype=jnp.int32)

    raw = init_raw_params(kp, INPUT_SIZE, HIDDEN_SIZE, OUTPUT_SIZE)
    params = prepare_params(raw, HIDDEN_SIZE, OUTPUT_SIZE)

    y = embedding_model_forward(params, x, lens)
    y = jax.block_until_ready(y)

    y_ref = reference_forward(raw, x, lens, HIDDEN_SIZE)
    assert y.shape == (B, OUTPUT_SIZE)
    assert jnp.allclose(y, y_ref, atol=1e-4, rtol=1e-4), "mismatch vs reference"

    print("KERNEL_OK")
</pallas_src>

<mosaic_0001>
module attributes {stable_mosaic.version = 11 : i64} {
  func.func @_embedding_fwd_kernel(%arg0: i32, %arg1: memref<64x16xf32, #tpu.memory_space<vmem>>, %arg2: memref<8x1xi32, #tpu.memory_space<vmem>>, %arg3: memref<16x512xf32, #tpu.memory_space<vmem>>, %arg4: memref<128x512xf32, #tpu.memory_space<vmem>>, %arg5: memref<1x512xf32, #tpu.memory_space<vmem>>, %arg6: memref<128x128xf32, #tpu.memory_space<vmem>>, %arg7: memref<1x128xf32, #tpu.memory_space<vmem>>, %arg8: memref<8x128xf32, #tpu.memory_space<vmem>>, %arg9: memref<64x512xf32, #tpu.memory_space<vmem>>) attributes {dimension_semantics = [#tpu.dimension_semantics<parallel>], iteration_bounds = array<i64: 1>, scalar_prefetch = 0 : i64, scratch_operands = 1 : i64, tpu.core_type = #tpu.core_type<tc>, window_params = [{transform_indices = @transform_0, window_bounds = array<i64: 64, 16>}, {transform_indices = @transform_1, window_bounds = array<i64: 8, 1>}, {pipeline_mode = #tpu.pipeline_mode<synchronous>, transform_indices = @transform_2, window_bounds = array<i64: 16, 512>}, {pipeline_mode = #tpu.pipeline_mode<synchronous>, transform_indices = @transform_3, window_bounds = array<i64: 128, 512>}, {pipeline_mode = #tpu.pipeline_mode<synchronous>, transform_indices = @transform_4, window_bounds = array<i64: 1, 512>}, {pipeline_mode = #tpu.pipeline_mode<synchronous>, transform_indices = @transform_5, window_bounds = array<i64: 128, 128>}, {pipeline_mode = #tpu.pipeline_mode<synchronous>, transform_indices = @transform_6, window_bounds = array<i64: 1, 128>}, {transform_indices = @transform_7, window_bounds = array<i64: 8, 128>}]} {
    %c0 = arith.constant 0 : index
    %c0_0 = arith.constant 0 : index
    %0 = vector.load %arg1[%c0, %c0_0] : memref<64x16xf32, #tpu.memory_space<vmem>>, vector<64x16xf32>
    %c0_1 = arith.constant 0 : index
    %c0_2 = arith.constant 0 : index
    %1 = vector.load %arg3[%c0_1, %c0_2] : memref<16x512xf32, #tpu.memory_space<vmem>>, vector<16x512xf32>
    %cst = arith.constant dense<0.000000e+00> : vector<64x512xf32>
    %2 = tpu.matmul %0, %1, %cst {dimension_numbers = #tpu.dot_dimension_numbers<[1], [0], [0], [1], [0, 0, 1, 1], [], []>} : vector<64x16xf32>, vector<16x512xf32>, vector<64x512xf32> -> vector<64x512xf32>
    %c0_3 = arith.constant 0 : index
    %c0_4 = arith.constant 0 : index
    %3 = vector.load %arg5[%c0_3, %c0_4] : memref<1x512xf32, #tpu.memory_space<vmem>>, vector<1x512xf32>
    %4 = vector.broadcast %3 : vector<1x512xf32> to vector<64x512xf32>
    %5 = arith.addf %2, %4 : vector<64x512xf32>
    %c0_5 = arith.constant 0 : index
    %c0_6 = arith.constant 0 : index
    %6 = vector.load %arg9[%c0_5, %c0_6] : memref<64x512xf32, #tpu.memory_space<vmem>>, vector<64x512xf32>
    tpu.vector_store %arg9[%c0_5, %c0_6], %5 {strides = array<i32>} : memref<64x512xf32, #tpu.memory_space<vmem>>, vector<64x512xf32>,
    %c0_7 = arith.constant 0 : index
    %c0_8 = arith.constant 0 : index
    %7 = vector.load %arg4[%c0_7, %c0_8] : memref<128x512xf32, #tpu.memory_space<vmem>>, vector<128x512xf32>
    %c0_9 = arith.constant 0 : index
    %c0_10 = arith.constant 0 : index
    %8 = vector.load %arg2[%c0_9, %c0_10] : memref<8x1xi32, #tpu.memory_space<vmem>>, vector<8x1xi32>
    %c1_i32 = arith.constant 1 : i32
    %9 = vector.broadcast %c1_i32 : i32 to vector<8x1xi32>
    %10 = arith.subi %8, %9 : vector<8x1xi32>
    %cst_11 = arith.constant 0.000000e+00 : f32
    %11 = vector.broadcast %cst_11 : f32 to vector<8x128xf32>
    %c0_i32 = arith.constant 0 : i32
    %c8_i32 = arith.constant 8 : i32
    %12 = arith.muli %c0_i32, %c8_i32 : i32
    %13 = tpu.assume_multiple %12, 8 : i32
    %14 = arith.index_cast %13 : i32 to index
    %c0_12 = arith.constant 0 : index
    %15 = vector.load %arg9[%14, %c0_12] : memref<64x512xf32, #tpu.memory_space<vmem>>, vector<8x512xf32>
    %cst_13 = arith.constant dense<0.000000e+00> : vector<8x512xf32>
    %16 = tpu.matmul %11, %7, %cst_13 {dimension_numbers = #tpu.dot_dimension_numbers<[1], [0], [0], [1], [0, 0, 1, 1], [], []>} : vector<8x128xf32>, vector<128x512xf32>, vector<8x512xf32> -> vector<8x512xf32>
    %17 = arith.addf %15, %16 : vector<8x512xf32>
    %18 = vector.extract_strided_slice %17 {offsets = [0, 0], sizes = [8, 384], strides = [1, 1]} : vector<8x512xf32> to vector<8x384xf32>
    %19 = arith.negf %18 : vector<8x384xf32>
    %20 = math.exp %19 : vector<8x384xf32>
    %cst_14 = arith.constant 1.000000e+00 : f32
    %21 = vector.broadcast %cst_14 : f32 to vector<8x384xf32>
    %22 = arith.addf %21, %20 : vector<8x384xf32>
    %23 = arith.divf %21, %22 : vector<8x384xf32>
    %24 = vector.extract_strided_slice %17 {offsets = [0, 384], sizes = [8, 128], strides = [1, 1]} : vector<8x512xf32> to vector<8x128xf32>
    %25 = math.tanh %24 : vector<8x128xf32>
    %26 = vector.extract_strided_slice %23 {offsets = [0, 0], sizes = [8, 128], strides = [1, 1]} : vector<8x384xf32> to vector<8x128xf32>
    %27 = vector.extract_strided_slice %23 {offsets = [0, 128], sizes = [8, 128], strides = [1, 1]} : vector<8x384xf32> to vector<8x128xf32>
    %28 = vector.extract_strided_slice %23 {offsets = [0, 256], sizes = [8, 128], strides = [1, 1]} : vector<8x384xf32> to vector<8x128xf32>
    %29 = arith.mulf %27, %11 : vector<8x128xf32>
    %30 = arith.mulf %26, %25 : vector<8x128xf32>
    %31 = arith.addf %29, %30 : vector<8x128xf32>
    %32 = math.tanh %31 : vector<8x128xf32>
    %33 = arith.mulf %28, %32 : vector<8x128xf32>
    %34 = vector.broadcast %c0_i32 : i32 to vector<8x1xi32>
    %35 = arith.cmpi eq, %10, %34 : vector<8x1xi32>
    %36 = vector.shape_cast %35 : vector<8x1xi1> to vector<8x1xi1>
    %37 = vector.broadcast %36 : vector<8x1xi1> to vector<8x128xi1>
    %38 = arith.select %37, %33, %11 : vector<8x128xi1>, vector<8x128xf32>
    %c1_i32_15 = arith.constant 1 : i32
    %c8_i32_16 = arith.constant 8 : i32
    %39 = arith.muli %c1_i32_15, %c8_i32_16 : i32
    %40 = tpu.assume_multiple %39, 8 : i32
    %41 = arith.index_cast %40 : i32 to index
    %c0_17 = arith.constant 0 : index
    %42 = vector.load %arg9[%41, %c0_17] : memref<64x512xf32, #tpu.memory_space<vmem>>, vector<8x512xf32>
    %cst_18 = arith.constant dense<0.000000e+00> : vector<8x512xf32>
    %43 = tpu.matmul %33, %7, %cst_18 {dimension_numbers = #tpu.dot_dimension_numbers<[1], [0], [0], [1], [0, 0, 1, 1], [], []>} : vector<8x128xf32>, vector<128x512xf32>, vector<8x512xf32> -> vector<8x512xf32>
    %44 = arith.addf %42, %43 : vector<8x512xf32>
    %45 = vector.extract_strided_slice %44 {offsets = [0, 0], sizes = [8, 384], strides = [1, 1]} : vector<8x512xf32> to vector<8x384xf32>
    %46 = arith.negf %45 : vector<8x384xf32>
    %47 = math.exp %46 : vector<8x384xf32>
    %cst_19 = arith.constant 1.000000e+00 : f32
    %48 = vector.broadcast %cst_19 : f32 to vector<8x384xf32>
    %49 = arith.addf %48, %47 : vector<8x384xf32>
    %50 = arith.divf %48, %49 : vector<8x384xf32>
    %51 = vector.extract_strided_slice %44 {offsets = [0, 384], sizes = [8, 128], strides = [1, 1]} : vector<8x512xf32> to vector<8x128xf32>
    %52 = math.tanh %51 : vector<8x128xf32>
    %53 = vector.extract_strided_slice %50 {offsets = [0, 0], sizes = [8, 128], strides = [1, 1]} : vector<8x384xf32> to vector<8x128xf32>
    %54 = vector.extract_strided_slice %50 {offsets = [0, 128], sizes = [8, 128], strides = [1, 1]} : vector<8x384xf32> to vector<8x128xf32>
    %55 = vector.extract_strided_slice %50 {offsets = [0, 256], sizes = [8, 128], strides = [1, 1]} : vector<8x384xf32> to vector<8x128xf32>
    %56 = arith.mulf %54, %31 : vector<8x128xf32>
    %57 = arith.mulf %53, %52 : vector<8x128xf32>
    %58 = arith.addf %56, %57 : vector<8x128xf32>
    %59 = math.tanh %58 : vector<8x128xf32>
    %60 = arith.mulf %55, %59 : vector<8x128xf32>
    %61 = vector.broadcast %c1_i32_15 : i32 to vector<8x1xi32>
    %62 = arith.cmpi eq, %10, %61 : vector<8x1xi32>
    %63 = vector.shape_cast %62 : vector<8x1xi1> to vector<8x1xi1>
    %64 = vector.broadcast %63 : vector<8x1xi1> to vector<8x128xi1>
    %65 = arith.select %64, %60, %38 : vector<8x128xi1>, vector<8x128xf32>
    %c2_i32 = arith.constant 2 : i32
    %c8_i32_20 = arith.constant 8 : i32
    %66 = arith.muli %c2_i32, %c8_i32_20 : i32
    %67 = tpu.assume_multiple %66, 8 : i32
    %68 = arith.index_cast %67 : i32 to index
    %c0_21 = arith.constant 0 : index
    %69 = vector.load %arg9[%68, %c0_21] : memref<64x512xf32, #tpu.memory_space<vmem>>, vector<8x512xf32>
    %cst_22 = arith.constant dense<0.000000e+00> : vector<8x512xf32>
    %70 = tpu.matmul %60, %7, %cst_22 {dimension_numbers = #tpu.dot_dimension_numbers<[1], [0], [0], [1], [0, 0, 1, 1], [], []>} : vector<8x128xf32>, vector<128x512xf32>, vector<8x512xf32> -> vector<8x512xf32>
    %71 = arith.addf %69, %70 : vector<8x512xf32>
    %72 = vector.extract_strided_slice %71 {offsets = [0, 0], sizes = [8, 384], strides = [1, 1]} : vector<8x512xf32> to vector<8x384xf32>
    %73 = arith.negf %72 : vector<8x384xf32>
    %74 = math.exp %73 : vector<8x384xf32>
    %cst_23 = arith.constant 1.000000e+00 : f32
    %75 = vector.broadcast %cst_23 : f32 to vector<8x384xf32>
    %76 = arith.addf %75, %74 : vector<8x384xf32>
    %77 = arith.divf %75, %76 : vector<8x384xf32>
    %78 = vector.extract_strided_slice %71 {offsets = [0, 384], sizes = [8, 128], strides = [1, 1]} : vector<8x512xf32> to vector<8x128xf32>
    %79 = math.tanh %78 : vector<8x128xf32>
    %80 = vector.extract_strided_slice %77 {offsets = [0, 0], sizes = [8, 128], strides = [1, 1]} : vector<8x384xf32> to vector<8x128xf32>
    %81 = vector.extract_strided_slice %77 {offsets = [0, 128], sizes = [8, 128], strides = [1, 1]} : vector<8x384xf32> to vector<8x128xf32>
    %82 = vector.extract_strided_slice %77 {offsets = [0, 256], sizes = [8, 128], strides = [1, 1]} : vector<8x384xf32> to vector<8x128xf32>
    %83 = arith.mulf %81, %58 : vector<8x128xf32>
    %84 = arith.mulf %80, %79 : vector<8x128xf32>
    %85 = arith.addf %83, %84 : vector<8x128xf32>
    %86 = math.tanh %85 : vector<8x128xf32>
    %87 = arith.mulf %82, %86 : vector<8x128xf32>
    %88 = vector.broadcast %c2_i32 : i32 to vector<8x1xi32>
    %89 = arith.cmpi eq, %10, %88 : vector<8x1xi32>
    %90 = vector.shape_cast %89 : vector<8x1xi1> to vector<8x1xi1>
    %91 = vector.broadcast %90 : vector<8x1xi1> to vector<8x128xi1>
    %92 = arith.select %91, %87, %65 : vector<8x128xi1>, vector<8x128xf32>
    %c3_i32 = arith.constant 3 : i32
    %c8_i32_24 = arith.constant 8 : i32
    %93 = arith.muli %c3_i32, %c8_i32_24 : i32
    %94 = tpu.assume_multiple %93, 8 : i32
    %95 = arith.index_cast %94 : i32 to index
    %c0_25 = arith.constant 0 : index
    %96 = vector.load %arg9[%95, %c0_25] : memref<64x512xf32, #tpu.memory_space<vmem>>, vector<8x512xf32>
    %cst_26 = arith.constant dense<0.000000e+00> : vector<8x512xf32>
    %97 = tpu.matmul %87, %7, %cst_26 {dimension_numbers = #tpu.dot_dimension_numbers<[1], [0], [0], [1], [0, 0, 1, 1], [], []>} : vector<8x128xf32>, vector<128x512xf32>, vector<8x512xf32> -> vector<8x512xf32>
    %98 = arith.addf %96, %97 : vector<8x512xf32>
    %99 = vector.extract_strided_slice %98 {offsets = [0, 0], sizes = [8, 384], strides = [1, 1]} : vector<8x512xf32> to vector<8x384xf32>
    %100 = arith.negf %99 : vector<8x384xf32>
    %101 = math.exp %100 : vector<8x384xf32>
    %cst_27 = arith.constant 1.000000e+00 : f32
    %102 = vector.broadcast %cst_27 : f32 to vector<8x384xf32>
    %103 = arith.addf %102, %101 : vector<8x384xf32>
    %104 = arith.divf %102, %103 : vector<8x384xf32>
    %105 = vector.extract_strided_slice %98 {offsets = [0, 384], sizes = [8, 128], strides = [1, 1]} : vector<8x512xf32> to vector<8x128xf32>
    %106 = math.tanh %105 : vector<8x128xf32>
    %107 = vector.extract_strided_slice %104 {offsets = [0, 0], sizes = [8, 128], strides = [1, 1]} : vector<8x384xf32> to vector<8x128xf32>
    %108 = vector.extract_strided_slice %104 {offsets = [0, 128], sizes = [8, 128], strides = [1, 1]} : vector<8x384xf32> to vector<8x128xf32>
    %109 = vector.extract_strided_slice %104 {offsets = [0, 256], sizes = [8, 128], strides = [1, 1]} : vector<8x384xf32> to vector<8x128xf32>
    %110 = arith.mulf %108, %85 : vector<8x128xf32>
    %111 = arith.mulf %107, %106 : vector<8x128xf32>
    %112 = arith.addf %110, %111 : vector<8x128xf32>
    %113 = math.tanh %112 : vector<8x128xf32>
    %114 = arith.mulf %109, %113 : vector<8x128xf32>
    %115 = vector.broadcast %c3_i32 : i32 to vector<8x1xi32>
    %116 = arith.cmpi eq, %10, %115 : vector<8x1xi32>
    %117 = vector.shape_cast %116 : vector<8x1xi1> to vector<8x1xi1>
    %118 = vector.broadcast %117 : vector<8x1xi1> to vector<8x128xi1>
    %119 = arith.select %118, %114, %92 : vector<8x128xi1>, vector<8x128xf32>
    %c4_i32 = arith.constant 4 : i32
    %c8_i32_28 = arith.constant 8 : i32
    %120 = arith.muli %c4_i32, %c8_i32_28 : i32
    %121 = tpu.assume_multiple %120, 8 : i32
    %122 = arith.index_cast %121 : i32 to index
    %c0_29 = arith.constant 0 : index
    %123 = vector.load %arg9[%122, %c0_29] : memref<64x512xf32, #tpu.memory_space<vmem>>, vector<8x512xf32>
    %cst_30 = arith.constant dense<0.000000e+00> : vector<8x512xf32>
    %124 = tpu.matmul %114, %7, %cst_30 {dimension_numbers = #tpu.dot_dimension_numbers<[1], [0], [0], [1], [0, 0, 1, 1], [], []>} : vector<8x128xf32>, vector<128x512xf32>, vector<8x512xf32> -> vector<8x512xf32>
    %125 = arith.addf %123, %124 : vector<8x512xf32>
    %126 = vector.extract_strided_slice %125 {offsets = [0, 0], sizes = [8, 384], strides = [1, 1]} : vector<8x512xf32> to vector<8x384xf32>
    %127 = arith.negf %126 : vector<8x384xf32>
    %128 = math.exp %127 : vector<8x384xf32>
    %cst_31 = arith.constant 1.000000e+00 : f32
    %129 = vector.broadcast %cst_31 : f32 to vector<8x384xf32>
    %130 = arith.addf %129, %128 : vector<8x384xf32>
    %131 = arith.divf %129, %130 : vector<8x384xf32>
    %132 = vector.extract_strided_slice %125 {offsets = [0, 384], sizes = [8, 128], strides = [1, 1]} : vector<8x512xf32> to vector<8x128xf32>
    %133 = math.tanh %132 : vector<8x128xf32>
    %134 = vector.extract_strided_slice %131 {offsets = [0, 0], sizes = [8, 128], strides = [1, 1]} : vector<8x384xf32> to vector<8x128xf32>
    %135 = vector.extract_strided_slice %131 {offsets = [0, 128], sizes = [8, 128], strides = [1, 1]} : vector<8x384xf32> to vector<8x128xf32>
    %136 = vector.extract_strided_slice %131 {offsets = [0, 256], sizes = [8, 128], strides = [1, 1]} : vector<8x384xf32> to vector<8x128xf32>
    %137 = arith.mulf %135, %112 : vector<8x128xf32>
    %138 = arith.mulf %134, %133 : vector<8x128xf32>
    %139 = arith.addf %137, %138 : vector<8x128xf32>
    %140 = math.tanh %139 : vector<8x128xf32>
    %141 = arith.mulf %136, %140 : vector<8x128xf32>
    %142 = vector.broadcast %c4_i32 : i32 to vector<8x1xi32>
    %143 = arith.cmpi eq, %10, %142 : vector<8x1xi32>
    %144 = vector.shape_cast %143 : vector<8x1xi1> to vector<8x1xi1>
    %145 = vector.broadcast %144 : vector<8x1xi1> to vector<8x128xi1>
    %146 = arith.select %145, %141, %119 : vector<8x128xi1>, vector<8x128xf32>
    %c5_i32 = arith.constant 5 : i32
    %c8_i32_32 = arith.constant 8 : i32
    %147 = arith.muli %c5_i32, %c8_i32_32 : i32
    %148 = tpu.assume_multiple %147, 8 : i32
    %149 = arith.index_cast %148 : i32 to index
    %c0_33 = arith.constant 0 : index
    %150 = vector.load %arg9[%149, %c0_33] : memref<64x512xf32, #tpu.memory_space<vmem>>, vector<8x512xf32>
    %cst_34 = arith.constant dense<0.000000e+00> : vector<8x512xf32>
    %151 = tpu.matmul %141, %7, %cst_34 {dimension_numbers = #tpu.dot_dimension_numbers<[1], [0], [0], [1], [0, 0, 1, 1], [], []>} : vector<8x128xf32>, vector<128x512xf32>, vector<8x512xf32> -> vector<8x512xf32>
    %152 = arith.addf %150, %151 : vector<8x512xf32>
    %153 = vector.extract_strided_slice %152 {offsets = [0, 0], sizes = [8, 384], strides = [1, 1]} : vector<8x512xf32> to vector<8x384xf32>
    %154 = arith.negf %153 : vector<8x384xf32>
    %155 = math.exp %154 : vector<8x384xf32>
    %cst_35 = arith.constant 1.000000e+00 : f32
    %156 = vector.broadcast %cst_35 : f32 to vector<8x384xf32>
    %157 = arith.addf %156, %155 : vector<8x384xf32>
    %158 = arith.divf %156, %157 : vector<8x384xf32>
    %159 = vector.extract_strided_slice %152 {offsets = [0, 384], sizes = [8, 128], strides = [1, 1]} : vector<8x512xf32> to vector<8x128xf32>
    %160 = math.tanh %159 : vector<8x128xf32>
    %161 = vector.extract_strided_slice %158 {offsets = [0, 0], sizes = [8, 128], strides = [1, 1]} : vector<8x384xf32> to vector<8x128xf32>
    %162 = vector.extract_strided_slice %158 {offsets = [0, 128], sizes = [8, 128], strides = [1, 1]} : vector<8x384xf32> to vector<8x128xf32>
    %163 = vector.extract_strided_slice %158 {offsets = [0, 256], sizes = [8, 128], strides = [1, 1]} : vector<8x384xf32> to vector<8x128xf32>
    %164 = arith.mulf %162, %139 : vector<8x128xf32>
    %165 = arith.mulf %161, %160 : vector<8x128xf32>
    %166 = arith.addf %164, %165 : vector<8x128xf32>
    %167 = math.tanh %166 : vector<8x128xf32>
    %168 = arith.mulf %163, %167 : vector<8x128xf32>
    %169 = vector.broadcast %c5_i32 : i32 to vector<8x1xi32>
    %170 = arith.cmpi eq, %10, %169 : vector<8x1xi32>
    %171 = vector.shape_cast %170 : vector<8x1xi1> to vector<8x1xi1>
    %172 = vector.broadcast %171 : vector<8x1xi1> to vector<8x128xi1>
    %173 = arith.select %172, %168, %146 : vector<8x128xi1>, vector<8x128xf32>
    %c6_i32 = arith.constant 6 : i32
    %c8_i32_36 = arith.constant 8 : i32
    %174 = arith.muli %c6_i32, %c8_i32_36 : i32
    %175 = tpu.assume_multiple %174, 8 : i32
    %176 = arith.index_cast %175 : i32 to index
    %c0_37 = arith.constant 0 : index
    %177 = vector.load %arg9[%176, %c0_37] : memref<64x512xf32, #tpu.memory_space<vmem>>, vector<8x512xf32>
    %cst_38 = arith.constant dense<0.000000e+00> : vector<8x512xf32>
    %178 = tpu.matmul %168, %7, %cst_38 {dimension_numbers = #tpu.dot_dimension_numbers<[1], [0], [0], [1], [0, 0, 1, 1], [], []>} : vector<8x128xf32>, vector<128x512xf32>, vector<8x512xf32> -> vector<8x512xf32>
    %179 = arith.addf %177, %178 : vector<8x512xf32>
    %180 = vector.extract_strided_slice %179 {offsets = [0, 0], sizes = [8, 384], strides = [1, 1]} : vector<8x512xf32> to vector<8x384xf32>
    %181 = arith.negf %180 : vector<8x384xf32>
    %182 = math.exp %181 : vector<8x384xf32>
    %cst_39 = arith.constant 1.000000e+00 : f32
    %183 = vector.broadcast %cst_39 : f32 to vector<8x384xf32>
    %184 = arith.addf %183, %182 : vector<8x384xf32>
    %185 = arith.divf %183, %184 : vector<8x384xf32>
    %186 = vector.extract_strided_slice %179 {offsets = [0, 384], sizes = [8, 128], strides = [1, 1]} : vector<8x512xf32> to vector<8x128xf32>
    %187 = math.tanh %186 : vector<8x128xf32>
    %188 = vector.extract_strided_slice %185 {offsets = [0, 0], sizes = [8, 128], strides = [1, 1]} : vector<8x384xf32> to vector<8x128xf32>
    %189 = vector.extract_strided_slice %185 {offsets = [0, 128], sizes = [8, 128], strides = [1, 1]} : vector<8x384xf32> to vector<8x128xf32>
    %190 = vector.extract_strided_slice %185 {offsets = [0, 256], sizes = [8, 128], strides = [1, 1]} : vector<8x384xf32> to vector<8x128xf32>
    %191 = arith.mulf %189, %166 : vector<8x128xf32>
    %192 = arith.mulf %188, %187 : vector<8x128xf32>
    %193 = arith.addf %191, %192 : vector<8x128xf32>
    %194 = math.tanh %193 : vector<8x128xf32>
    %195 = arith.mulf %190, %194 : vector<8x128xf32>
    %196 = vector.broadcast %c6_i32 : i32 to vector<8x1xi32>
    %197 = arith.cmpi eq, %10, %196 : vector<8x1xi32>
    %198 = vector.shape_cast %197 : vector<8x1xi1> to vector<8x1xi1>
    %199 = vector.broadcast %198 : vector<8x1xi1> to vector<8x128xi1>
    %200 = arith.select %199, %195, %173 : vector<8x128xi1>, vector<8x128xf32>
    %c7_i32 = arith.constant 7 : i32
    %c8_i32_40 = arith.constant 8 : i32
    %201 = arith.muli %c7_i32, %c8_i32_40 : i32
    %202 = tpu.assume_multiple %201, 8 : i32
    %203 = arith.index_cast %202 : i32 to index
    %c0_41 = arith.constant 0 : index
    %204 = vector.load %arg9[%203, %c0_41] : memref<64x512xf32, #tpu.memory_space<vmem>>, vector<8x512xf32>
    %cst_42 = arith.constant dense<0.000000e+00> : vector<8x512xf32>
    %205 = tpu.matmul %195, %7, %cst_42 {dimension_numbers = #tpu.dot_dimension_numbers<[1], [0], [0], [1], [0, 0, 1, 1], [], []>} : vector<8x128xf32>, vector<128x512xf32>, vector<8x512xf32> -> vector<8x512xf32>
    %206 = arith.addf %204, %205 : vector<8x512xf32>
    %207 = vector.extract_strided_slice %206 {offsets = [0, 0], sizes = [8, 384], strides = [1, 1]} : vector<8x512xf32> to vector<8x384xf32>
    %208 = arith.negf %207 : vector<8x384xf32>
    %209 = math.exp %208 : vector<8x384xf32>
    %cst_43 = arith.constant 1.000000e+00 : f32
    %210 = vector.broadcast %cst_43 : f32 to vector<8x384xf32>
    %211 = arith.addf %210, %209 : vector<8x384xf32>
    %212 = arith.divf %210, %211 : vector<8x384xf32>
    %213 = vector.extract_strided_slice %206 {offsets = [0, 384], sizes = [8, 128], strides = [1, 1]} : vector<8x512xf32> to vector<8x128xf32>
    %214 = math.tanh %213 : vector<8x128xf32>
    %215 = vector.extract_strided_slice %212 {offsets = [0, 0], sizes = [8, 128], strides = [1, 1]} : vector<8x384xf32> to vector<8x128xf32>
    %216 = vector.extract_strided_slice %212 {offsets = [0, 128], sizes = [8, 128], strides = [1, 1]} : vector<8x384xf32> to vector<8x128xf32>
    %217 = vector.extract_strided_slice %212 {offsets = [0, 256], sizes = [8, 128], strides = [1, 1]} : vector<8x384xf32> to vector<8x128xf32>
    %218 = arith.mulf %216, %193 : vector<8x128xf32>
    %219 = arith.mulf %215, %214 : vector<8x128xf32>
    %220 = arith.addf %218, %219 : vector<8x128xf32>
    %221 = math.tanh %220 : vector<8x128xf32>
    %222 = arith.mulf %217, %221 : vector<8x128xf32>
    %223 = vector.broadcast %c7_i32 : i32 to vector<8x1xi32>
    %224 = arith.cmpi eq, %10, %223 : vector<8x1xi32>
    %225 = vector.shape_cast %224 : vector<8x1xi1> to vector<8x1xi1>
    %226 = vector.broadcast %225 : vector<8x1xi1> to vector<8x128xi1>
    %227 = arith.select %226, %222, %200 : vector<8x128xi1>, vector<8x128xf32>
    %c8_i32_44 = arith.constant 8 : i32
    %c0_45 = arith.constant 0 : index
    %c0_46 = arith.constant 0 : index
    %228 = vector.load %arg6[%c0_45, %c0_46] : memref<128x128xf32, #tpu.memory_space<vmem>>, vector<128x128xf32>
    %cst_47 = arith.constant dense<0.000000e+00> : vector<8x128xf32>
    %229 = tpu.matmul %227, %228, %cst_47 {dimension_numbers = #tpu.dot_dimension_numbers<[1], [0], [0], [1], [0, 0, 1, 1], [], []>} : vector<8x128xf32>, vector<128x128xf32>, vector<8x128xf32> -> vector<8x128xf32>
    %c0_48 = arith.constant 0 : index
    %c0_49 = arith.constant 0 : index
    %230 = vector.load %arg7[%c0_48, %c0_49] : memref<1x128xf32, #tpu.memory_space<vmem>>, vector<1x128xf32>
    %231 = vector.broadcast %230 : vector<1x128xf32> to vector<8x128xf32>
    %232 = arith.addf %229, %231 : vector<8x128xf32>
    %c0_50 = arith.constant 0 : index
    %c0_51 = arith.constant 0 : index
    %233 = vector.load %arg8[%c0_50, %c0_51] : memref<8x128xf32, #tpu.memory_space<vmem>>, vector<8x128xf32>
    tpu.vector_store %arg8[%c0_50, %c0_51], %232 {strides = array<i32>} : memref<8x128xf32, #tpu.memory_space<vmem>>, vector<8x128xf32>,
    return
  }
  func.func @transform_0(%arg0: i32) -> (i32, i32) {
    %c0_i32 = arith.constant 0 : i32
    %c0_i32_0 = arith.constant 0 : i32
    return %arg0, %c0_i32 : i32, i32
  }
  func.func @transform_1(%arg0: i32) -> (i32, i32) {
    %c0_i32 = arith.constant 0 : i32
    %c0_i32_0 = arith.constant 0 : i32
    return %arg0, %c0_i32 : i32, i32
  }
  func.func @transform_2(%arg0: i32) -> (i32, i32) {
    %c0_i32 = arith.constant 0 : i32
    %c0_i32_0 = arith.constant 0 : i32
    %c0_i32_1 = arith.constant 0 : i32
    return %c0_i32, %c0_i32_0 : i32, i32
  }
  func.func @transform_3(%arg0: i32) -> (i32, i32) {
    %c0_i32 = arith.constant 0 : i32
    %c0_i32_0 = arith.constant 0 : i32
    %c0_i32_1 = arith.constant 0 : i32
    return %c0_i32, %c0_i32_0 : i32, i32
  }
  func.func @transform_4(%arg0: i32) -> (i32, i32) {
    %c0_i32 = arith.constant 0 : i32
    %c0_i32_0 = arith.constant 0 : i32
    %c0_i32_1 = arith.constant 0 : i32
    return %c0_i32, %c0_i32_0 : i32, i32
  }
  func.func @transform_5(%arg0: i32) -> (i32, i32) {
    %c0_i32 = arith.constant 0 : i32
    %c0_i32_0 = arith.constant 0 : i32
    %c0_i32_1 = arith.constant 0 : i32
    return %c0_i32, %c0_i32_0 : i32, i32
  }
  func.func @transform_6(%arg0: i32) -> (i32, i32) {
    %c0_i32 = arith.constant 0 : i32
    %c0_i32_0 = arith.constant 0 : i32
    %c0_i32_1 = arith.constant 0 : i32
    return %c0_i32, %c0_i32_0 : i32, i32
  }
  func.func @transform_7(%arg0: i32) -> (i32, i32) {
    %c0_i32 = arith.constant 0 : i32
    %c0_i32_0 = arith.constant 0 : i32
    return %arg0, %c0_i32 : i32, i32
  }
}

</mosaic_0001>

<bundles_post_ra>
// kernel: tpu_custom_call.1
= control target key start
LH: loop header
LB: loop body
LE: loop exit
PB: predicated region body
PF: predicated region fallthrough
CT: control target
= control target key end

     0   :  { %12 = vsyncpa [#allocation4], 0  ;;  %s3533_s0 = inlined_call_operand.vmem [shape: f32[64,16], index: 0, kind: input, shape index: {}]   ;;  %s3534_s1 = inlined_call_operand.vmem [shape: s32[8,1], index: 1, kind: input, shape index: {}]   ;;  %s3535_s2 = inlined_call_operand.vmem [shape: f32[16,512], index: 2, kind: input, shape index: {}]   ;;  %s3536_s3 = inlined_call_operand.hbm [shape: f32[128,512], index: 3, kind: input, shape index: {}]   ;;  %s3537_s4 = inlined_call_operand.vmem [shape: f32[1,512], index: 4, kind: input, shape index: {}]   ;;  %s3538_s5 = inlined_call_operand.hbm [shape: f32[128,128], index: 5, kind: input, shape index: {}]   ;;  %s3539_s6 = inlined_call_operand.vmem [shape: f32[1,128], index: 6, kind: input, shape index: {}]   ;;  %s3540_s7 = inlined_call_operand.hbm [shape: f32[8,128], index: 7, kind: output, shape index: {}]  }
   0x1   :  { %13 = vsyncpa [#allocation7], 0 }
   0x2   :  { %14 = vsyncpa [#allocation5], 0  ;;  %s2395_s24 = smov [#allocation3]  }
   0x3   :  { %s26_s25 = sshll.u32 %s2395_s24, 4  ;;  %s27_s25 = int_to_ptr.vmem [resolvable:$true] %s26_s25 }
   0x4   :  { %s2337_s26 = scalar_lea.vmem %s27_s25, 8192  ;;  %p2342_p1 = scmp.lt.s32.totalorder %s27_s25, %s27_s25 }
   0x5   :  { %p2338_p0 = scmp.ne.s32.totalorder %s27_s25, %s2337_s26  ;;  %p2343_p2 = scmp.lt.s32.totalorder %s2337_s26, %s2337_s26 }
   0x7   :  { %p2344_p3 = por %p2343_p2, %p2342_p1 }
   0x9   :  { %p2345_p4 = pnand %p2344_p3, %p2338_p0 }
   0xb   :  { %2348 = shalt.err (!%p2345_p4)
}
   0xc   :  { %s2396_s27 = smov 512   ;;  %s2397_s28 = smov 32  }
   0xd   :  { %32 = dma.hbm_to_vmem [thread:$0]  %s3536_s3, 8192, %s27_s25, [#allocation4], %s2396_s27, %s2396_s27, %s2397_s28  }
   0xe   :  { %s2398_s8 = smov [#allocation6]  }
   0xf   :  { %s40_s9 = sshll.u32 %s2398_s8, 4  ;;  %s41_s9 = int_to_ptr.vmem [resolvable:$true] %s40_s9 }
  0x10   :  { %s2357_s10 = scalar_lea.vmem %s41_s9, 2048  ;;  %p2362_p6 = scmp.lt.s32.totalorder %s41_s9, %s41_s9 }
  0x11   :  { %p2358_p5 = scmp.ne.s32.totalorder %s41_s9, %s2357_s10  ;;  %p2363_p7 = scmp.lt.s32.totalorder %s2357_s10, %s2357_s10 }
  0x13   :  { %p2364_p8 = por %p2363_p7, %p2362_p6 }
  0x15   :  { %p2365_p9 = pnand %p2364_p8, %p2358_p5 }
  0x17   :  { %2368 = shalt.err (!%p2365_p9)
}
  0x18   :  { %s2399_s11 = smov 128   ;;  %s2400_s12 = smov 8  }
  0x19   :  { %46 = dma.hbm_to_vmem [thread:$0]  %s3538_s5, 2048, %s41_s9, [#allocation7], %s2399_s11, %s2399_s11, %s2400_s12  }
  0x1a   :  { %2389 = dma.done.wait [#allocation4], 8192  }
  0x1b   :  { %2390 = vsyncadd [#allocation4], 4294959104 }
  0x1c   :  { %2391 = dma.done.wait [#allocation7], 2048  }
  0x1d   :  { %2392 = vsyncadd [#allocation7], 4294965248  ;;  %v3545_v0 = vmov 0.0   ;;  %v3541_v1 = vmov 0   ;;  %v68_v2 = vld [vmem:[%s3535_s2 + $0x28] sm:$0xff]  ;;  %v70_v3 = vld [vmem:[%s3535_s2 + $0x38] sm:$0xff] }
  0x1e   :  { %182 = vmatprep.mubr.f32.mxu0 %v3545_v0  ;;  %295 = vmatprep.mubr.f32.mxu1 %v3545_v0  ;;  %v67_v4 = vld [vmem:[%s3535_s2 + $0x20] sm:$0xff]  ;;  %v69_v5 = vld [vmem:[%s3535_s2 + $0x30] sm:$0xff]  ;;  %v64_v6 = vld [vmem:[%s3535_s2 + $0x8] sm:$0xff]  ;;  %vm93_vm0 = vcmask 130048   ;;  %s2404_s22 = smov [#allocation8]  }
  0x1f   :  { %2135 = vset.pattern.permute.xlu0 %v3541_v1  ;;  %2136 = vset.pattern.permute.xlu1 %v3541_v1  ;;  %v66_v7 = vld [vmem:[%s3535_s2 + $0x18] sm:$0xff]  ;;  %v63_v8 = vld [vmem:[%s3535_s2] sm:$0xff]  ;;  %v65_v9 = vld [vmem:[%s3535_s2 + $0x10] sm:$0xff]  ;;  %s2014_s23 = sshll.u32 %s2404_s22, 4  ;;  %s2015_s23 = int_to_ptr.vmem [resolvable:$true] %s2014_s23 }
  0x20   :  { %146 = vmatprep.subr.mxu0 %v68_v2  ;;  %259 = vmatprep.subr.mxu1 %v70_v3  ;;  %v55_v10 = vld [vmem:[%s3533_s0] sm:$0xff]  ;;  %v2482_v11 = vld [vmem:[#allocation3 + $0x1e8] sm:$0xff]  ;;  %v2484_v12 = vld [vmem:[#allocation3 + $0x1f8] sm:$0xff]  ;;  %s2369_s24 = scalar_lea.vmem %s2015_s23, 128  ;;  %p2374_p11 = scmp.lt.s32.totalorder %s2015_s23, %s2015_s23 }
  0x21   :  { %147 = vmatpush1.msra.mxu0 %v67_v4  ;;  %260 = vmatpush1.msra.mxu1 %v69_v5  ;;  %3644 = vst [vmem:[#allocation12_spill] sm:$0xff] %v2482_v11  ;;  %3645 = vst [vmem:[#allocation13_spill] sm:$0xff] %v2484_v12  ;;  %v2486_v13 = vld [vmem:[#allocation3 + $0x1e0] sm:$0xff]  ;;  %v2488_v14 = vld [vmem:[#allocation3 + $0x1f0] sm:$0xff]  ;;  %p2370_p10 = scmp.ne.s32.totalorder %s2015_s23, %s2369_s24  ;;  %p2375_p12 = scmp.lt.s32.totalorder %s2369_s24, %s2369_s24 }
  0x22   :  { %148 = vmatprep.subr.mxu0 %v64_v6  ;;  %261 = vmatprep.subr.mxu1 %v66_v7  ;;  %v2492_v15 = vld [vmem:[#allocation3 + $0x1c8] sm:$0xff]  ;;  %v2494_v16 = vld [vmem:[#allocation3 + $0x1d8] sm:$0xff]  ;;  %v2500_v17 = vld [vmem:[#allocation3 + $0x1c0] sm:$0xff] }
  0x23   :  { %149 = vmatpush1.msra.mxu0 %v63_v8  ;;  %262 = vmatpush1.msra.mxu1 %v65_v9  ;;  %v2502_v18 = vld [vmem:[#allocation3 + $0x1d0] sm:$0xff]  ;;  %v56_v19 = vld [vmem:[%s3533_s0 + $0x8] sm:$0xff]  ;;  %v2513_v21 = vld [vmem:[#allocation3 + $0x1b8] sm:$0xff]  ;;  %p2376_p13 = por %p2375_p12, %p2374_p11 }
  0x24   :  { %2031 = vmatmul.mubr.msk.f32.vlgmr.msra.gmra.mxu0 %vm93_vm0, %v55_v10  ;;  %2039 = vmatmul.mubr.msk.f32.vlgmr.msra.gmra.mxu1 %vm93_vm0, %v55_v10  ;;  %v2511_v20 = vld [vmem:[#allocation3 + $0x1a8] sm:$0xff]  ;;  %v2517_v22 = vld [vmem:[#allocation3 + $0x1a0] sm:$0xff]  ;;  %v2519_v23 = vld [vmem:[#allocation3 + $0x1b0] sm:$0xff] }
  0x25   :  { %449 = vmatprep.subr.mxu0 %v2482_v11  ;;  %520 = vmatprep.subr.mxu1 %v2484_v12  ;;  %v2523_v24 = vld [vmem:[#allocation3 + $0x188] sm:$0xff]  ;;  %v2525_v25 = vld [vmem:[#allocation3 + $0x198] sm:$0xff]  ;;  %v2531_v26 = vld [vmem:[#allocation3 + $0x180] sm:$0xff]  ;;  %p2377_p0 = pnand %p2376_p13, %p2370_p10 }
  0x26   :  { %450 = vmatpush1.msra.mxu0 %v2486_v13  ;;  %521 = vmatpush1.msra.mxu1 %v2488_v14  ;;  %v2533_v27 = vld [vmem:[#allocation3 + $0x190] sm:$0xff]  ;;  %v2542_v29 = vld [vmem:[#allocation3 + $0x168] sm:$0xff]  ;;  %v2544_v30 = vld [vmem:[#allocation3 + $0x178] sm:$0xff] }
  0x27   :  { %451 = vmatprep.subr.mxu0 %v2492_v15  ;;  %522 = vmatprep.subr.mxu1 %v2494_v16  ;;  %v57_v28 = vld [vmem:[%s3533_s0 + $0x10] sm:$0xff]  ;;  %v2548_v31 = vld [vmem:[#allocation3 + $0x160] sm:$0xff]  ;;  %v2554_v33 = vld [vmem:[#allocation3 + $0x148] sm:$0xff] }
  0x28   :  { %188 = vmatprep.mubr.f32.mxu0 %v3545_v0  ;;  %301 = vmatprep.mubr.f32.mxu1 %v3545_v0  ;;  %v2550_v32 = vld [vmem:[#allocation3 + $0x170] sm:$0xff]  ;;  %v2556_v34 = vld [vmem:[#allocation3 + $0x158] sm:$0xff]  ;;  %v2562_v35 = vld [vmem:[#allocation3 + $0x140] sm:$0xff] }
  0x29   :  { %452 = vmatpush1.msra.mxu0 %v2500_v17  ;;  %523 = vmatpush1.msra.mxu1 %v2502_v18  ;;  %v2564_v36 = vld [vmem:[#allocation3 + $0x150] sm:$0xff]  ;;  %v58_v37 = vld [vmem:[%s3533_s0 + $0x18] sm:$0xff]  ;;  %v2573_v38 = vld [vmem:[#allocation3 + $0x128] sm:$0xff] }
  0x2a   :  { %2032 = vmatmul.mubr.msk.f32.gmra.mxu0 %vm93_vm0, %v56_v19  ;;  %2040 = vmatmul.mubr.msk.f32.gmra.mxu1 %vm93_vm0, %v56_v19  ;;  %v2575_v39 = vld [vmem:[#allocation3 + $0x138] sm:$0xff]  ;;  %v2579_v40 = vld [vmem:[#allocation3 + $0x120] sm:$0xff]  ;;  %v2581_v41 = vld [vmem:[#allocation3 + $0x130] sm:$0xff] }
  0x2b   :  { %453 = vmatprep.subr.mxu0 %v2511_v20  ;;  %524 = vmatprep.subr.mxu1 %v2513_v21  ;;  %v2585_v42 = vld [vmem:[#allocation3 + $0x108] sm:$0xff]  ;;  %v2587_v43 = vld [vmem:[#allocation3 + $0x118] sm:$0xff]  ;;  %v2593_v44 = vld [vmem:[#allocation3 + $0x100] sm:$0xff] }
  0x2c   :  { %454 = vmatpush1.msra.mxu0 %v2517_v22  ;;  %525 = vmatpush1.msra.mxu1 %v2519_v23  ;;  %v2595_v45 = vld [vmem:[#allocation3 + $0x110] sm:$0xff]  ;;  %v59_v46 = vld [vmem:[%s3533_s0 + $0x20] sm:$0xff]  ;;  %v2604_v47 = vld [vmem:[#allocation3 + $0xe8] sm:$0xff] }
  0x2d   :  { %455 = vmatprep.subr.mxu0 %v2523_v24  ;;  %526 = vmatprep.subr.mxu1 %v2525_v25  ;;  %v2606_v48 = vld [vmem:[#allocation3 + $0xf8] sm:$0xff]  ;;  %v2610_v49 = vld [vmem:[#allocation3 + $0xe0] sm:$0xff]  ;;  %v2612_v50 = vld [vmem:[#allocation3 + $0xf0] sm:$0xff] }
  0x2e   :  { %194 = vmatprep.mubr.f32.mxu0 %v3545_v0  ;;  %307 = vmatprep.mubr.f32.mxu1 %v3545_v0  ;;  %v2616_v51 = vld [vmem:[#allocation3 + $0xc8] sm:$0xff]  ;;  %v2618_v52 = vld [vmem:[#allocation3 + $0xd8] sm:$0xff]  ;;  %v2624_v53 = vld [vmem:[#allocation3 + $0xc0] sm:$0xff] }
  0x2f   :  { %456 = vmatpush1.msra.mxu0 %v2531_v26  ;;  %527 = vmatpush1.msra.mxu1 %v2533_v27  ;;  %v2626_v54 = vld [vmem:[#allocation3 + $0xd0] sm:$0xff]  ;;  %v60_v55 = vld [vmem:[%s3533_s0 + $0x28] sm:$0xff]  ;;  %v2637_v57 = vld [vmem:[#allocation3 + $0xb8] sm:$0xff] }
  0x30   :  { %2033 = vmatmul.mubr.msk.f32.gmra.mxu0 %vm93_vm0, %v57_v28  ;;  %2041 = vmatmul.mubr.msk.f32.gmra.mxu1 %vm93_vm0, %v57_v28  ;;  %v2635_v56 = vld [vmem:[#allocation3 + $0xa8] sm:$0xff]  ;;  %v2641_v58 = vld [vmem:[#allocation3 + $0xa0] sm:$0xff]  ;;  %v2643_v59 = vld [vmem:[#allocation3 + $0xb0] sm:$0xff] }
  0x31   :  { %457 = vmatprep.subr.mxu0 %v2542_v29  ;;  %528 = vmatprep.subr.mxu1 %v2544_v30  ;;  %v2647_v60 = vld [vmem:[#allocation3 + $0x88] sm:$0xff]  ;;  %v2649_v61 = vld [vmem:[#allocation3 + $0x98] sm:$0xff]  ;;  %v2655_v62 = vld [vmem:[#allocation3 + $0x80] sm:$0xff] }
  0x32   :  { %458 = vmatpush1.msra.mxu0 %v2548_v31  ;;  %529 = vmatpush1.msra.mxu1 %v2550_v32  ;;  %3646 = vst [vmem:[#allocation14_spill] sm:$0xff] %v2647_v60  ;;  %3647 = vst [vmem:[#allocation15_spill] sm:$0xff] %v2649_v61  ;;  %v2657_v63 = vld [vmem:[#allocation3 + $0x90] sm:$0xff]  ;;  %v2666_v3 = vld [vmem:[#allocation3 + $0x68] sm:$0xff] }
  0x33   :  { %459 = vmatprep.subr.mxu0 %v2554_v33  ;;  %530 = vmatprep.subr.mxu1 %v2556_v34  ;;  %3648 = vst [vmem:[#allocation16_spill] sm:$0xff] %v2655_v62  ;;  %3649 = vst [vmem:[#allocation17_spill] sm:$0xff] %v2657_v63  ;;  %v61_v2 = vld [vmem:[%s3533_s0 + $0x30] sm:$0xff]  ;;  %v2668_v4 = vld [vmem:[#allocation3 + $0x78] sm:$0xff] }
  0x34   :  { %200 = vmatprep.mubr.f32.mxu0 %v3545_v0  ;;  %313 = vmatprep.mubr.f32.mxu1 %v3545_v0  ;;  %3650 = vst [vmem:[#allocation18_spill] sm:$0xff] %v2666_v3  ;;  %3651 = vst [vmem:[#allocation19_spill] sm:$0xff] %v2668_v4  ;;  %v2672_v5 = vld [vmem:[#allocation3 + $0x60] sm:$0xff]  ;;  %v2674_v6 = vld [vmem:[#allocation3 + $0x70] sm:$0xff] }
  0x35   :  { %460 = vmatpush1.msra.mxu0 %v2562_v35  ;;  %531 = vmatpush1.msra.mxu1 %v2564_v36  ;;  %3652 = vst [vmem:[#allocation20_spill] sm:$0xff] %v2672_v5  ;;  %3653 = vst [vmem:[#allocation21_spill] sm:$0xff] %v2674_v6  ;;  %v2678_v7 = vld [vmem:[#allocation3 + $0x48] sm:$0xff]  ;;  %v2680_v8 = vld [vmem:[#allocation3 + $0x58] sm:$0xff] }
  0x36   :  { %2034 = vmatmul.mubr.msk.f32.gmra.mxu0 %vm93_vm0, %v58_v37  ;;  %2042 = vmatmul.mubr.msk.f32.gmra.mxu1 %vm93_vm0, %v58_v37  ;;  %3654 = vst [vmem:[#allocation22_spill] sm:$0xff] %v2678_v7  ;;  %3655 = vst [vmem:[#allocation23_spill] sm:$0xff] %v2680_v8  ;;  %v440_v9 = vld [vmem:[%s3534_s1] sm:$0xff]  ;;  %v2691_v19 = vld [vmem:[#allocation3 + $0x50] sm:$0xff] }
  0x37   :  { %461 = vmatprep.subr.mxu0 %v2573_v38  ;;  %532 = vmatprep.subr.mxu1 %v2575_v39  ;;  %v2689_v10 = vld [vmem:[#allocation3 + $0x40] sm:$0xff]  ;;  %3657 = vst [vmem:[#allocation25_spill] sm:$0xff] %v2691_v19  ;;  %v62_v28 = vld [vmem:[%s3533_s0 + $0x38] sm:$0xff]  ;;  %v2698_v37 = vadd.s32 4294967295, %v440_v9  ;;  %v2710_v1 = vld [vmem:[#allocation3 + $0x30] sm:$0xff] }
  0x38   :  { %462 = vmatpush1.msra.mxu0 %v2579_v40  ;;  %533 = vmatpush1.msra.mxu1 %v2581_v41  ;;  %3656 = vst [vmem:[#allocation24_spill] sm:$0xff] %v2689_v10  ;;  %3662 = vst [vmem:[#allocation30_spill] sm:$0xff] %v2710_v1  ;;  %v2714_v9 = vld [vmem:[#allocation3 + $0x8] sm:$0xff] }
  0x39   :  { %463 = vmatprep.subr.mxu0 %v2585_v42  ;;  %534 = vmatprep.subr.mxu1 %v2587_v43  ;;  %3658 = vst [vmem:[#allocation26_spill] sm:$0xff] %v2698_v37  ;;  %3663 = vst [vmem:[#allocation31_spill] sm:$0xff] %v2714_v9  ;;  %vm619_vm1 = vcmp.eq.s32.totalorder %v2698_v37, 0  ;;  %vm803_vm2 = vcmp.eq.s32.totalorder %v2698_v37, 1 }
  0x3a   :  { %206 = vmatprep.mubr.f32.mxu0 %v3545_v0  ;;  %319 = vmatprep.mubr.f32.mxu1 %v3545_v0 }
  0x3b   :  { %464 = vmatpush1.msra.mxu0 %v2593_v44  ;;  %535 = vmatpush1.msra.mxu1 %v2595_v45 }
  0x3c   :  { %2035 = vmatmul.mubr.msk.f32.gmra.mxu0 %vm93_vm0, %v59_v46  ;;  %2043 = vmatmul.mubr.msk.f32.gmra.mxu1 %vm93_vm0, %v59_v46  ;;  %v2702_v46 = vld [vmem:[#allocation3 + $0x28] sm:$0xff] }
  0x3d   :  { %465 = vmatprep.subr.mxu0 %v2604_v47  ;;  %536 = vmatprep.subr.mxu1 %v2606_v48  ;;  %3659 = vst [vmem:[#allocation27_spill] sm:$0xff] %v2702_v46 }
  0x3e   :  { %466 = vmatpush1.msra.mxu0 %v2610_v49  ;;  %537 = vmatpush1.msra.mxu1 %v2612_v50 }
  0x3f   :  { %467 = vmatprep.subr.mxu0 %v2616_v51  ;;  %538 = vmatprep.subr.mxu1 %v2618_v52 }
  0x40   :  { %212 = vmatprep.mubr.f32.mxu0 %v3545_v0  ;;  %325 = vmatprep.mubr.f32.mxu1 %v3545_v0 }
  0x41   :  { %468 = vmatpush1.msra.mxu0 %v2624_v53  ;;  %539 = vmatpush1.msra.mxu1 %v2626_v54 }
  0x42   :  { %2036 = vmatmul.mubr.msk.f32.gmra.mxu0 %vm93_vm0, %v60_v55  ;;  %2044 = vmatmul.mubr.msk.f32.gmra.mxu1 %vm93_vm0, %v60_v55  ;;  %v2704_v55 = vld [vmem:[#allocation3 + $0x38] sm:$0xff] }
  0x43   :  { %469 = vmatprep.subr.mxu0 %v2635_v56  ;;  %540 = vmatprep.subr.mxu1 %v2637_v57  ;;  %3660 = vst [vmem:[#allocation28_spill] sm:$0xff] %v2704_v55 }
  0x44   :  { %470 = vmatpush1.msra.mxu0 %v2641_v58  ;;  %541 = vmatpush1.msra.mxu1 %v2643_v59 }
  0x45   :  { %471 = vmatprep.subr.mxu0 %v2647_v60  ;;  %542 = vmatprep.subr.mxu1 %v2649_v61 }
  0x46   :  { %218 = vmatprep.mubr.f32.mxu0 %v3545_v0  ;;  %331 = vmatprep.mubr.f32.mxu1 %v3545_v0 }
  0x47   :  { %472 = vmatpush1.msra.mxu0 %v2655_v62  ;;  %543 = vmatpush1.msra.mxu1 %v2657_v63 }
  0x48   :  { %2037 = vmatmul.mubr.msk.f32.gmra.mxu0 %vm93_vm0, %v61_v2  ;;  %2045 = vmatmul.mubr.msk.f32.gmra.mxu1 %vm93_vm0, %v61_v2  ;;  %v2708_v2 = vld [vmem:[#allocation3 + $0x20] sm:$0xff] }
  0x49   :  { %473 = vmatprep.subr.mxu0 %v2666_v3  ;;  %544 = vmatprep.subr.mxu1 %v2668_v4  ;;  %3661 = vst [vmem:[#allocation29_spill] sm:$0xff] %v2708_v2 }
  0x4a   :  { %474 = vmatpush1.msra.mxu0 %v2672_v5  ;;  %545 = vmatpush1.msra.mxu1 %v2674_v6 }
  0x4b   :  { %475 = vmatprep.subr.mxu0 %v2678_v7  ;;  %546 = vmatprep.subr.mxu1 %v2680_v8  ;;  %v2716_v8 = vld [vmem:[#allocation3 + $0x18] sm:$0xff] }
  0x4c   :  { %224 = vmatprep.mubr.f32.mxu0 %v3545_v0  ;;  %337 = vmatprep.mubr.f32.mxu1 %v3545_v0  ;;  %3664 = vst [vmem:[#allocation32_spill] sm:$0xff] %v2716_v8  ;;  %v2720_v0 = vld [vmem:[#allocation3] sm:$0xff] }
  0x4d   :  { %476 = vmatpush1.msra.mxu0 %v2689_v10  ;;  %547 = vmatpush1.msra.mxu1 %v2691_v19  ;;  %3665 = vst [vmem:[#allocation33_spill] sm:$0xff] %v2720_v0  ;;  %v2725_v19 = vld [vmem:[#allocation3 + $0x10] sm:$0xff] }
  0x4e   :  { %2038 = vmatmul.mubr.msk.f32.gmra.mxu0 %vm93_vm0, %v62_v28  ;;  %2046 = vmatmul.mubr.msk.f32.gmra.mxu1 %vm93_vm0, %v62_v28  ;;  %3666 = vst [vmem:[#allocation34_spill] sm:$0xff] %v2725_v19  ;;  %v3667_v28 = vmov 0.0   ;;  %vm2403_vm0 = vmmov 0  }
  0x4f   :  { %477 = vmatprep.subr.mxu0 %v2702_v46  ;;  %548 = vmatprep.subr.mxu1 %v2704_v55  ;;  %v3668_v46 = vmov 0  }
  0x50   :  { %478 = vmatpush1.msra.mxu0 %v2708_v2  ;;  %549 = vmatpush1.msra.mxu1 %v2710_v1  ;;  %v620_v55 = vsel %vm619_vm1, 1, %v3668_v46 }
  0x51   :  { %479 = vmatprep.subr.mxu0 %v2714_v9  ;;  %550 = vmatprep.subr.mxu1 %v2716_v8 }
  0x52   :  { %480 = vmatpush1.msra.mxu0 %v2720_v0  ;;  %513 = vmatprep.mubr.f32.mxu0 %v3667_v28 }
  0x53   :  { %551 = vmatpush1.msra.mxu1 %v2725_v19  ;;  %584 = vmatprep.mubr.f32.mxu1 %v3667_v28 }
  0x54   :  { %514 = vmatmul.mubr.f32.vlgmr.msra.gmra.mxu0 %v3667_v28  ;;  %585 = vmatmul.mubr.f32.vlgmr.msra.gmra.mxu1 %v3667_v28 }
  0x55   :  { %622 = vperm.xlu0 %2135, %v620_v55   ;;  %633 = vmatprep.subr.mxu0 %v2482_v11  ;;  %v3669_v55 = vld [vmem:[#allocation23_spill] sm:$0xff] }
  0x56   :  { %704 = vmatprep.subr.mxu1 %v2484_v12  ;;  %634 = vmatpush1.msra.mxu0 %v2486_v13 }
  0x57   :  { %705 = vmatpush1.msra.mxu1 %v2488_v14  ;;  %635 = vmatprep.subr.mxu0 %v2492_v15 }
  0x58   :  { %706 = vmatprep.subr.mxu1 %v2494_v16  ;;  %636 = vmatpush1.msra.mxu0 %v2500_v17 }
  0x59   :  { %707 = vmatpush1.msra.mxu1 %v2502_v18  ;;  %637 = vmatprep.subr.mxu0 %v2511_v20 }
  0x5a   :  { %708 = vmatprep.subr.mxu1 %v2513_v21  ;;  %638 = vmatpush1.msra.mxu0 %v2517_v22 }
  0x5b   :  { %709 = vmatpush1.msra.mxu1 %v2519_v23  ;;  %639 = vmatprep.subr.mxu0 %v2523_v24 }
  0x5c   :  { %710 = vmatprep.subr.mxu1 %v2525_v25  ;;  %640 = vmatpush1.msra.mxu0 %v2531_v26 }
  0x5d   :  { %711 = vmatpush1.msra.mxu1 %v2533_v27  ;;  %641 = vmatprep.subr.mxu0 %v2542_v29 }
  0x5e   :  { %712 = vmatprep.subr.mxu1 %v2544_v30  ;;  %642 = vmatpush1.msra.mxu0 %v2548_v31 }
  0x5f   :  { %713 = vmatpush1.msra.mxu1 %v2550_v32  ;;  %643 = vmatprep.subr.mxu0 %v2554_v33 }
  0x60   :  { %714 = vmatprep.subr.mxu1 %v2556_v34  ;;  %644 = vmatpush1.msra.mxu0 %v2562_v35 }
  0x61   :  { %715 = vmatpush1.msra.mxu1 %v2564_v36  ;;  %645 = vmatprep.subr.mxu0 %v2573_v38 }
  0x62   :  { %716 = vmatprep.subr.mxu1 %v2575_v39  ;;  %646 = vmatpush1.msra.mxu0 %v2579_v40 }
  0x63   :  { %717 = vmatpush1.msra.mxu1 %v2581_v41  ;;  %647 = vmatprep.subr.mxu0 %v2585_v42 }
  0x64   :  { %718 = vmatprep.subr.mxu1 %v2587_v43  ;;  %648 = vmatpush1.msra.mxu0 %v2593_v44 }
  0x65   :  { %719 = vmatpush1.msra.mxu1 %v2595_v45  ;;  %649 = vmatprep.subr.mxu0 %v2604_v47 }
  0x66   :  { %720 = vmatprep.subr.mxu1 %v2606_v48  ;;  %650 = vmatpush1.msra.mxu0 %v2610_v49 }
  0x67   :  { %721 = vmatpush1.msra.mxu1 %v2612_v50  ;;  %651 = vmatprep.subr.mxu0 %v2616_v51 }
  0x68   :  { %722 = vmatprep.subr.mxu1 %v2618_v52  ;;  %652 = vmatpush1.msra.mxu0 %v2624_v53 }
  0x69   :  { %723 = vmatpush1.msra.mxu1 %v2626_v54  ;;  %653 = vmatprep.subr.mxu0 %v2635_v56 }
  0x6a   :  { %724 = vmatprep.subr.mxu1 %v2637_v57  ;;  %654 = vmatpush1.msra.mxu0 %v2641_v58 }
  0x6b   :  { %725 = vmatpush1.msra.mxu1 %v2643_v59  ;;  %655 = vmatprep.subr.mxu0 %v2647_v60  ;;  %v3670_v60 = vld [vmem:[#allocation25_spill] sm:$0xff] }
  0x6c   :  { %726 = vmatprep.subr.mxu1 %v2649_v61  ;;  %656 = vmatpush1.msra.mxu0 %v2655_v62  ;;  %v3671_v61 = vld [vmem:[#allocation27_spill] sm:$0xff]  ;;  %v3672_v62 = vld [vmem:[#allocation28_spill] sm:$0xff] }
  0x6d   :  { %727 = vmatpush1.msra.mxu1 %v2657_v63  ;;  %657 = vmatprep.subr.mxu0 %v2666_v3 }
  0x6e   :  { %728 = vmatprep.subr.mxu1 %v2668_v4  ;;  %658 = vmatpush1.msra.mxu0 %v2672_v5 }
  0x6f   :  { %729 = vmatpush1.msra.mxu1 %v2674_v6  ;;  %659 = vmatprep.subr.mxu0 %v2678_v7 }
  0x70   :  { %730 = vmatprep.subr.mxu1 %v3669_v55  ;;  %660 = vmatpush1.msra.mxu0 %v2689_v10 }
  0x71   :  { %731 = vmatpush1.msra.mxu1 %v3670_v60  ;;  %661 = vmatprep.subr.mxu0 %v3671_v61 }
  0x72   :  { %732 = vmatprep.subr.mxu1 %v3672_v62  ;;  %662 = vmatpush1.msra.mxu0 %v2708_v2 }
  0x73   :  { %733 = vmatpush1.msra.mxu1 %v2710_v1  ;;  %663 = vmatprep.subr.mxu0 %v2714_v9  ;;  %v804_v1 = vsel %vm803_vm2, 1, %v3668_v46  ;;  %v73_v9 = vlaneseq }
  0x74   :  { %734 = vmatprep.subr.mxu1 %v2716_v8  ;;  %664 = vmatpush1.msra.mxu0 %v2720_v0 }
  0x75   :  { %697 = vmatprep.mubr.f32.mxu0 %v3667_v28  ;;  %735 = vmatpush1.msra.mxu1 %v2725_v19  ;;  %v74_v2 = vshrl.u32 %v73_v9, 7  ;;  %v71_v19 = vld [vmem:[%s3537_s4] sm:$0xf] }
  0x76   :  { %768 = vmatprep.mubr.f32.mxu1 %v3667_v28  ;;  %817 = vmatprep.subr.mxu0 %v2482_v11 }
  0x77   :  { %888 = vmatprep.subr.mxu1 %v2484_v12  ;;  %806 = vperm.xlu0 %2135, %v804_v1   ;;  %v75_v62 = vsub.s32 0, %v74_v2  ;;  %v83_v61 = vsub.s32 2, %v74_v2  ;;  %v79_v37 = vsub.s32 1, %v74_v2  ;;  %v87_v28 = vsub.s32 3, %v74_v2 }
  0x79   :  { %v76_v46 = vrot.slane %v71_v19, %v75_v62  ;;  %v2817_v1 = vrot.slane %v71_v19, %v83_v61  ;;  %v80_v10 = vrot.slane %v71_v19, %v79_v37  ;;  %v2819_v55 = vrot.slane %v71_v19, %v87_v28 }
  0xe4   :  { %v2806_v8 = vpop.f32.mrf.mxu0  ;;  %v2808_v0 = vpop.f32.mrf.mxu1 }
  0xe6   :  { %v2813_v11 = vpop.f32.mrf.mxu0  ;;  %v2815_v12 = vpop.f32.mrf.mxu1 }
  0xea   :  { %v190_v9 = vpop.f32.mrf.mxu0  ;;  %v303_v60 = vpop.f32.mrf.mxu1 }
  0xeb   :  { %v2821_v7 = vadd.f32 %v190_v9, %v76_v46  ;;  %v2824_v6 = vadd.f32 %v303_v60, %v2817_v1 }
  0xec   :  { %v192_v5 = vpop.f32.mrf.mxu0  ;;  %v305_v4 = vpop.f32.mrf.mxu1 }
  0xed   :  { %3673 = vst [vmem:[#allocation35_spill] sm:$0xff] %v2821_v7  ;;  %3674 = vst [vmem:[#allocation36_spill] sm:$0xff] %v2824_v6  ;;  %v2826_v3 = vadd.f32 %v192_v5, %v80_v10  ;;  %v2829_v63 = vadd.f32 %v305_v4, %v2819_v55 }
  0xef   :  { %3675 = vst [vmem:[#allocation37_spill] sm:$0xff] %v2826_v3  ;;  %3676 = vst [vmem:[#allocation38_spill] sm:$0xff] %v2829_v63 }
  0xf0   :  { %v196_v62 = vpop.f32.mrf.mxu0  ;;  %v309_v61 = vpop.f32.mrf.mxu1 }
  0xf1   :  { %v2831_v2 = vadd.f32 %v196_v62, %v76_v46  ;;  %v2834_v37 = vadd.f32 %v309_v61, %v2817_v1 }
  0xf2   :  { %v198_v19 = vpop.f32.mrf.mxu0  ;;  %v311_v28 = vpop.f32.mrf.mxu1 }
  0xf3   :  { %3677 = vst [vmem:[#allocation39_spill] sm:$0xff] %v2831_v2  ;;  %3678 = vst [vmem:[#allocation40_spill] sm:$0xff] %v2834_v37  ;;  %v2836_v9 = vadd.f32 %v198_v19, %v80_v10  ;;  %v2839_v60 = vadd.f32 %v311_v28, %v2819_v55 }
  0xf5   :  { %3679 = vst [vmem:[#allocation41_spill] sm:$0xff] %v2836_v9  ;;  %3680 = vst [vmem:[#allocation42_spill] sm:$0xff] %v2839_v60 }
  0xf6   :  { %v202_v6 = vpop.f32.mrf.mxu0  ;;  %v315_v5 = vpop.f32.mrf.mxu1 }
  0xf7   :  { %v2841_v3 = vadd.f32 %v202_v6, %v76_v46  ;;  %v2844_v4 = vadd.f32 %v315_v5, %v2817_v1 }
  0xf8   :  { %v204_v63 = vpop.f32.mrf.mxu0  ;;  %v317_v62 = vpop.f32.mrf.mxu1 }
  0xf9   :  { %3681 = vst [vmem:[#allocation43_spill] sm:$0xff] %v2841_v3  ;;  %3682 = vst [vmem:[#allocation44_spill] sm:$0xff] %v2844_v4  ;;  %v2846_v2 = vadd.f32 %v204_v63, %v80_v10  ;;  %v2849_v61 = vadd.f32 %v317_v62, %v2819_v55 }
  0xfb   :  { %3683 = vst [vmem:[#allocation45_spill] sm:$0xff] %v2846_v2  ;;  %3684 = vst [vmem:[#allocation46_spill] sm:$0xff] %v2849_v61 }
  0xfc   :  { %v208_v37 = vpop.f32.mrf.mxu0  ;;  %v321_v19 = vpop.f32.mrf.mxu1 }
  0xfd   :  { %v2851_v9 = vadd.f32 %v208_v37, %v76_v46  ;;  %v2854_v28 = vadd.f32 %v321_v19, %v2817_v1 }
  0xfe   :  { %v210_v60 = vpop.f32.mrf.mxu0  ;;  %v323_v6 = vpop.f32.mrf.mxu1 }
  0xff   :  { %3685 = vst [vmem:[#allocation47_spill] sm:$0xff] %v2851_v9  ;;  %3686 = vst [vmem:[#allocation48_spill] sm:$0xff] %v2854_v28  ;;  %v2856_v3 = vadd.f32 %v210_v60, %v80_v10  ;;  %v2859_v5 = vadd.f32 %v323_v6, %v2819_v55 }
 0x101   :  { %3687 = vst [vmem:[#allocation49_spill] sm:$0xff] %v2856_v3  ;;  %3688 = vst [vmem:[#allocation50_spill] sm:$0xff] %v2859_v5 }
 0x102   :  { %v214_v4 = vpop.f32.mrf.mxu0  ;;  %v327_v63 = vpop.f32.mrf.mxu1 }
 0x103   :  { %v2861_v2 = vadd.f32 %v214_v4, %v76_v46  ;;  %v2864_v62 = vadd.f32 %v327_v63, %v2817_v1 }
 0x104   :  { %v216_v61 = vpop.f32.mrf.mxu0  ;;  %v329_v37 = vpop.f32.mrf.mxu1 }
 0x105   :  { %3689 = vst [vmem:[#allocation51_spill] sm:$0xff] %v2861_v2  ;;  %3690 = vst [vmem:[#allocation52_spill] sm:$0xff] %v2864_v62  ;;  %v2866_v9 = vadd.f32 %v216_v61, %v80_v10  ;;  %v2869_v19 = vadd.f32 %v329_v37, %v2819_v55 }
 0x107   :  { %3691 = vst [vmem:[#allocation53_spill] sm:$0xff] %v2866_v9  ;;  %3692 = vst [vmem:[#allocation54_spill] sm:$0xff] %v2869_v19 }
 0x108   :  { %v220_v28 = vpop.f32.mrf.mxu0  ;;  %v333_v60 = vpop.f32.mrf.mxu1 }
 0x109   :  { %v2871_v3 = vadd.f32 %v220_v28, %v76_v46  ;;  %v2874_v6 = vadd.f32 %v333_v60, %v2817_v1 }
 0x10a   :  { %v222_v5 = vpop.f32.mrf.mxu0  ;;  %v335_v4 = vpop.f32.mrf.mxu1 }
 0x10b   :  { %3693 = vst [vmem:[#allocation55_spill] sm:$0xff] %v2871_v3  ;;  %3694 = vst [vmem:[#allocation56_spill] sm:$0xff] %v2874_v6  ;;  %v2876_v2 = vadd.f32 %v222_v5, %v80_v10  ;;  %v2879_v63 = vadd.f32 %v335_v4, %v2819_v55  ;;  %v185_v5 = vadd.f32 %v2806_v8, %v76_v46 }
 0x10c   :  { %v187_v4 = vadd.f32 %v2813_v11, %v80_v10 }
 0x10d   :  { %3695 = vst [vmem:[#allocation57_spill] sm:$0xff] %v2876_v2  ;;  %3696 = vst [vmem:[#allocation58_spill] sm:$0xff] %v2879_v63 }
 0x10e   :  { %v226_v62 = vpop.f32.mrf.mxu0  ;;  %v339_v61 = vpop.f32.mrf.mxu1 }
 0x10f   :  { %v2881_v9 = vadd.f32 %v226_v62, %v76_v46  ;;  %v2884_v37 = vadd.f32 %v339_v61, %v2817_v1 }
 0x110   :  { %v228_v19 = vpop.f32.mrf.mxu0  ;;  %v341_v28 = vpop.f32.mrf.mxu1 }
 0x111   :  { %3697 = vst [vmem:[#allocation59_spill] sm:$0xff] %v2881_v9  ;;  %3698 = vst [vmem:[#allocation60_spill] sm:$0xff] %v2884_v37  ;;  %v2886_v3 = vadd.f32 %v228_v19, %v80_v10  ;;  %v2889_v60 = vadd.f32 %v341_v28, %v2819_v55  ;;  %v298_v19 = vadd.f32 %v2808_v0, %v2817_v1 }
 0x112   :  { %v300_v28 = vadd.f32 %v2815_v12, %v2819_v55 }
 0x113   :  { %3699 = vst [vmem:[#allocation61_spill] sm:$0xff] %v2886_v3  ;;  %3700 = vst [vmem:[#allocation62_spill] sm:$0xff] %v2889_v60 }
 0x114   :  { %v515_v6 = vpop.f32.mrf.mxu0  ;;  %v586_v61 = vpop.f32.mrf.mxu1 }
 0x115   :  { %v591_v63 = vadd.f32 %v515_v6, %v185_v5  ;;  %v593_v37 = vadd.f32 %v586_v61, %v298_v19  ;;  %v3704_v61 = vld [vmem:[#allocation17_spill] sm:$0xff]  ;;  %v3705_v19 = vld [vmem:[#allocation18_spill] sm:$0xff] }
 0x116   :  { %v517_v2 = vpop.f32.mrf.mxu0  ;;  %v588_v3 = vpop.f32.mrf.mxu1 }
 0x117   :  { %v2048_v7 = vmul.f32 -1.442695, %v591_v63  ;;  %v592_v62 = vadd.f32 %v517_v2, %v187_v4  ;;  %v2050_v8 = vmul.f32 -1.442695, %v593_v37  ;;  %v594_v60 = vadd.f32 %v588_v3, %v300_v28  ;;  %v3701_v37 = vld [vmem:[#allocation14_spill] sm:$0xff]  ;;  %v3706_v28 = vld [vmem:[#allocation19_spill] sm:$0xff] }
 0x119   :  { %2137 = vpow2.f32 %v2048_v7  ;;  %v2049_v9 = vmul.f32 -1.442695, %v592_v62  ;;  %v3703_v62 = vld [vmem:[#allocation16_spill] sm:$0xff] }
 0x11b   :  { %2139 = vpow2.f32 %v2049_v9 }
 0x11c   :  { %2141 = vpow2.f32 %v2050_v8  ;;  %v3707_v8 = vld [vmem:[#allocation20_spill] sm:$0xff] }
 0x126   :  { %v2138_v46 = vpop.eup %2137 }
 0x127   :  { %v604_v11 = vadd.f32 1.0, %v2138_v46  ;;  %v3708_v46 = vld [vmem:[#allocation21_spill] sm:$0xff] }
 0x128   :  { %v2140_v10 = vpop.eup %2139 }
 0x129   :  { %2143 = vrcp.f32 %v604_v11  ;;  %v605_v2 = vadd.f32 1.0, %v2140_v10  ;;  %v2142_v7 = vpop.eup %2141  ;;  %v3709_v11 = vld [vmem:[#allocation22_spill] sm:$0xff]  ;;  %v3710_v10 = vld [vmem:[#allocation23_spill] sm:$0xff] }
 0x12a   :  { %2145 = vtanh.f32 %v594_v60  ;;  %v606_v0 = vadd.f32 1.0, %v2142_v7  ;;  %v3702_v60 = vld [vmem:[#allocation15_spill] sm:$0xff]  ;;  %v3712_v7 = vld [vmem:[#allocation25_spill] sm:$0xff] }
 0x12b   :  { %2147 = vrcp.f32 %v605_v2  ;;  %v3711_v2 = vld [vmem:[#allocation24_spill] sm:$0xff] }
 0x12c   :  { %2149 = vrcp.f32 %v606_v0  ;;  %v3716_v0 = vld [vmem:[#allocation30_spill] sm:$0xff] }
 0x136   :  { %v2144_v9 = vpop.eup %2143 }
 0x137   :  { %v2146_v6 = vpop.eup %2145 }
 0x138   :  { %v2148_v63 = vpop.eup %2147  ;;  %v615_v5 = vmul.f32 %v2146_v6, %v2144_v9  ;;  %v3713_v9 = vld [vmem:[#allocation27_spill] sm:$0xff]  ;;  %v3714_v6 = vld [vmem:[#allocation28_spill] sm:$0xff] }
 0x139   :  { %v614_v1 = vmul.f32 0.0, %v2148_v63  ;;  %v2150_v12 = vpop.eup %2149  ;;  %v3715_v63 = vld [vmem:[#allocation29_spill] sm:$0xff] }
 0x13b   :  { %v2897_v4 = vadd.f32 %v615_v5, %v614_v1  ;;  %v3717_v1 = vld [vmem:[#allocation31_spill] sm:$0xff]  ;;  %v3718_v5 = vld [vmem:[#allocation32_spill] sm:$0xff] }
 0x13d   :  { %2151 = vtanh.f32 %v2897_v4 }
 0x14a   :  { %v2152_v3 = vpop.eup %2151 }
 0x14b   :  { %v2900_v55 = vmul.f32 %v2152_v3, %v2150_v12  ;;  %v3719_v12 = vld [vmem:[#allocation33_spill] sm:$0xff]  ;;  %v3720_v3 = vmov 0.0  }
 0x14d   :  { %698 = vmatmul.mubr.f32.vlgmr.msra.gmra.mxu0 %v2900_v55  ;;  %769 = vmatmul.mubr.f32.vlgmr.msra.gmra.mxu1 %v2900_v55 }
 0x14e   :  { %818 = vmatpush1.msra.mxu0 %v2486_v13  ;;  %889 = vmatpush1.msra.mxu1 %v2488_v14 }
 0x14f   :  { %819 = vmatprep.subr.mxu0 %v2492_v15  ;;  %890 = vmatprep.subr.mxu1 %v2494_v16 }
 0x150   :  { %820 = vmatpush1.msra.mxu0 %v2500_v17  ;;  %891 = vmatpush1.msra.mxu1 %v2502_v18 }
 0x151   :  { %821 = vmatprep.subr.mxu0 %v2511_v20  ;;  %892 = vmatprep.subr.mxu1 %v2513_v21 }
 0x152   :  { %822 = vmatpush1.msra.mxu0 %v2517_v22  ;;  %893 = vmatpush1.msra.mxu1 %v2519_v23 }
 0x153   :  { %823 = vmatprep.subr.mxu0 %v2523_v24  ;;  %894 = vmatprep.subr.mxu1 %v2525_v25 }
 0x154   :  { %824 = vmatpush1.msra.mxu0 %v2531_v26  ;;  %895 = vmatpush1.msra.mxu1 %v2533_v27 }
 0x155   :  { %825 = vmatprep.subr.mxu0 %v2542_v29  ;;  %896 = vmatprep.subr.mxu1 %v2544_v30 }
 0x156   :  { %826 = vmatpush1.msra.mxu0 %v2548_v31  ;;  %897 = vmatpush1.msra.mxu1 %v2550_v32 }
 0x157   :  { %827 = vmatprep.subr.mxu0 %v2554_v33  ;;  %898 = vmatprep.subr.mxu1 %v2556_v34 }
 0x158   :  { %828 = vmatpush1.msra.mxu0 %v2562_v35  ;;  %899 = vmatpush1.msra.mxu1 %v2564_v36 }
 0x159   :  { %829 = vmatprep.subr.mxu0 %v2573_v38  ;;  %900 = vmatprep.subr.mxu1 %v2575_v39 }
 0x15a   :  { %830 = vmatpush1.msra.mxu0 %v2579_v40  ;;  %901 = vmatpush1.msra.mxu1 %v2581_v41 }
 0x15b   :  { %831 = vmatprep.subr.mxu0 %v2585_v42  ;;  %902 = vmatprep.subr.mxu1 %v2587_v43 }
 0x15c   :  { %832 = vmatpush1.msra.mxu0 %v2593_v44  ;;  %903 = vmatpush1.msra.mxu1 %v2595_v45 }
 0x15d   :  { %833 = vmatprep.subr.mxu0 %v2604_v47  ;;  %904 = vmatprep.subr.mxu1 %v2606_v48 }
 0x15e   :  { %834 = vmatpush1.msra.mxu0 %v2610_v49  ;;  %905 = vmatpush1.msra.mxu1 %v2612_v50 }
 0x15f   :  { %835 = vmatprep.subr.mxu0 %v2616_v51  ;;  %906 = vmatprep.subr.mxu1 %v2618_v52 }
 0x160   :  { %836 = vmatpush1.msra.mxu0 %v2624_v53  ;;  %907 = vmatpush1.msra.mxu1 %v2626_v54 }
 0x161   :  { %837 = vmatprep.subr.mxu0 %v2635_v56  ;;  %908 = vmatprep.subr.mxu1 %v2637_v57 }
 0x162   :  { %838 = vmatpush1.msra.mxu0 %v2641_v58  ;;  %909 = vmatpush1.msra.mxu1 %v2643_v59 }
 0x163   :  { %839 = vmatprep.subr.mxu0 %v3701_v37  ;;  %910 = vmatprep.subr.mxu1 %v3702_v60 }
 0x164   :  { %840 = vmatpush1.msra.mxu0 %v3703_v62  ;;  %911 = vmatpush1.msra.mxu1 %v3704_v61  ;;  %v3729_v61 = vld [vmem:[#allocation38_spill] sm:$0xff] }
 0x165   :  { %841 = vmatprep.subr.mxu0 %v3705_v19  ;;  %912 = vmatprep.subr.mxu1 %v3706_v28  ;;  %v3728_v28 = vld [vmem:[#allocation36_spill] sm:$0xff] }
 0x166   :  { %842 = vmatpush1.msra.mxu0 %v3707_v8  ;;  %913 = vmatpush1.msra.mxu1 %v3708_v46  ;;  %v3727_v46 = vld [vmem:[#allocation37_spill] sm:$0xff] }
 0x167   :  { %843 = vmatprep.subr.mxu0 %v3709_v11  ;;  %914 = vmatprep.subr.mxu1 %v3710_v10  ;;  %v3721_v10 = vld [vmem:[#allocation34_spill] sm:$0xff] }
 0x168   :  { %844 = vmatpush1.msra.mxu0 %v3711_v2  ;;  %915 = vmatpush1.msra.mxu1 %v3712_v7  ;;  %v3722_v7 = vld [vmem:[#allocation12_spill] sm:$0xff]  ;;  %v3726_v2 = vld [vmem:[#allocation35_spill] sm:$0xff] }
 0x169   :  { %845 = vmatprep.subr.mxu0 %v3713_v9  ;;  %916 = vmatprep.subr.mxu1 %v3714_v6  ;;  %v3723_v9 = vld [vmem:[#allocation13_spill] sm:$0xff]  ;;  %v3724_v6 = vld [vmem:[#allocation26_spill] sm:$0xff] }
 0x16a   :  { %846 = vmatpush1.msra.mxu0 %v3715_v63  ;;  %917 = vmatpush1.msra.mxu1 %v3716_v0  ;;  %vm987_vm3 = vcmp.eq.s32.totalorder %v3724_v6, 2  ;;  %v3725_v63 = vmov 0  }
 0x16b   :  { %847 = vmatprep.subr.mxu0 %v3717_v1  ;;  %918 = vmatprep.subr.mxu1 %v3718_v5  ;;  %v988_v0 = vsel %vm987_vm3, 1, %v3725_v63 }
 0x16c   :  { %848 = vmatpush1.msra.mxu0 %v3719_v12  ;;  %881 = vmatprep.mubr.f32.mxu0 %v3720_v3 }
 0x16d   :  { %919 = vmatpush1.msra.mxu1 %v3721_v10  ;;  %952 = vmatprep.mubr.f32.mxu1 %v3720_v3 }
 0x16e   :  { %1001 = vmatprep.subr.mxu0 %v3722_v7  ;;  %1072 = vmatprep.subr.mxu1 %v3723_v9 }
 0x16f   :  { %990 = vperm.xlu1 %2136, %v988_v0  }
 0x20d   :  { %v699_v1 = vpop.f32.mrf.mxu0  ;;  %v770_v3 = vpop.f32.mrf.mxu1 }
 0x20e   :  { %v775_v5 = vadd.f32 %v699_v1, %v3726_v2  ;;  %v777_v7 = vadd.f32 %v770_v3, %v3728_v28 }
 0x20f   :  { %v701_v11 = vpop.f32.mrf.mxu0  ;;  %v772_v19 = vpop.f32.mrf.mxu1 }
 0x210   :  { %v2051_v12 = vmul.f32 -1.442695, %v775_v5  ;;  %v776_v8 = vadd.f32 %v701_v11, %v3727_v46  ;;  %v2053_v9 = vmul.f32 -1.442695, %v777_v7  ;;  %v778_v6 = vadd.f32 %v772_v19, %v3729_v61 }
 0x212   :  { %2153 = vpow2.f32 %v2051_v12  ;;  %v2052_v10 = vmul.f32 -1.442695, %v776_v8 }
 0x214   :  { %2155 = vpow2.f32 %v2052_v10 }
 0x215   :  { %2157 = vpow2.f32 %v2053_v9 }
 0x216   :  { %2159 = vtanh.f32 %v778_v6 }
 0x21f   :  { %v2154_v62 = vpop.eup %2153 }
 0x220   :  { %v788_v63 = vadd.f32 1.0, %v2154_v62  ;;  %v623_v62 = vpop.permute.xlu0 %622 }
 0x221   :  { %v2156_v0 = vpop.eup %2155  ;;  %vm624_vm4 = vcmp.eq.s32.totalorder %v623_v62, 1 }
 0x222   :  { %2161 = vrcp.f32 %v788_v63  ;;  %v789_v2 = vadd.f32 1.0, %v2156_v0  ;;  %v2158_v1 = vpop.eup %2157  ;;  %v625_v3 = vsel %vm624_vm4, %v2900_v55, 0.0 }
 0x223   :  { %v2160_v46 = vpop.eup %2159  ;;  %v790_v5 = vadd.f32 1.0, %v2158_v1 }
 0x224   :  { %2163 = vrcp.f32 %v789_v2  ;;  %v807_v61 = vpop.permute.xlu0 %806 }
 0x225   :  { %2165 = vrcp.f32 %v790_v5  ;;  %vm808_vm5 = vcmp.eq.s32.totalorder %v807_v61, 1  ;;  %v991_v61 = vpop.permute.xlu1 %990 }
 0x226   :  { %vm992_vm7 = vcmp.eq.s32.totalorder %v991_v61, 1  ;;  %v3153_v61 = vld [vmem:[#allocation3 + $0x110] sm:$0xff] }
 0x227   :  { %3759 = vst [vmem:[#allocation35_spill] sm:$0xff] %v3153_v61 }
 0x22f   :  { %v2162_v11 = vpop.eup %2161 }
 0x230   :  { %v799_v8 = vmul.f32 %v2162_v11, %v2160_v46 }
 0x231   :  { %v2164_v10 = vpop.eup %2163 }
 0x232   :  { %v798_v28 = vmul.f32 %v2164_v10, %v2897_v4  ;;  %v2166_v19 = vpop.eup %2165 }
 0x234   :  { %v2977_v12 = vadd.f32 %v799_v8, %v798_v28 }
 0x236   :  { %2167 = vtanh.f32 %v2977_v12 }
 0x243   :  { %v2168_v6 = vpop.eup %2167 }
 0x244   :  { %v802_v63 = vmul.f32 %v2168_v6, %v2166_v19 }
 0x246   :  { %v2981_v7 = vsel %vm808_vm5, %v802_v63, %v625_v3  ;;  %882 = vmatmul.mubr.f32.vlgmr.msra.gmra.mxu0 %v802_v63  ;;  %953 = vmatmul.mubr.f32.vlgmr.msra.gmra.mxu1 %v802_v63 }
 0x247   :  { %1002 = vmatpush1.msra.mxu0 %v2486_v13  ;;  %1073 = vmatpush1.msra.mxu1 %v2488_v14  ;;  %v3730_v13 = vld [vmem:[#allocation16_spill] sm:$0xff]  ;;  %v3731_v14 = vld [vmem:[#allocation17_spill] sm:$0xff] }
 0x248   :  { %1003 = vmatprep.subr.mxu0 %v2492_v15  ;;  %1074 = vmatprep.subr.mxu1 %v2494_v16  ;;  %v3732_v15 = vld [vmem:[#allocation18_spill] sm:$0xff]  ;;  %v3733_v16 = vld [vmem:[#allocation19_spill] sm:$0xff] }
 0x249   :  { %1004 = vmatpush1.msra.mxu0 %v2500_v17  ;;  %1075 = vmatpush1.msra.mxu1 %v2502_v18  ;;  %v3734_v17 = vld [vmem:[#allocation20_spill] sm:$0xff]  ;;  %v3735_v18 = vld [vmem:[#allocation21_spill] sm:$0xff] }
 0x24a   :  { %1005 = vmatprep.subr.mxu0 %v2511_v20  ;;  %1076 = vmatprep.subr.mxu1 %v2513_v21  ;;  %v3736_v20 = vld [vmem:[#allocation22_spill] sm:$0xff]  ;;  %v3737_v21 = vld [vmem:[#allocation23_spill] sm:$0xff] }
 0x24b   :  { %1006 = vmatpush1.msra.mxu0 %v2517_v22  ;;  %1077 = vmatpush1.msra.mxu1 %v2519_v23  ;;  %v3738_v22 = vld [vmem:[#allocation24_spill] sm:$0xff]  ;;  %v3739_v23 = vld [vmem:[#allocation25_spill] sm:$0xff] }
 0x24c   :  { %1007 = vmatprep.subr.mxu0 %v2523_v24  ;;  %1078 = vmatprep.subr.mxu1 %v2525_v25  ;;  %v3740_v24 = vld [vmem:[#allocation27_spill] sm:$0xff]  ;;  %v3741_v25 = vld [vmem:[#allocation28_spill] sm:$0xff] }
 0x24d   :  { %1008 = vmatpush1.msra.mxu0 %v2531_v26  ;;  %1079 = vmatpush1.msra.mxu1 %v2533_v27  ;;  %v3742_v26 = vld [vmem:[#allocation29_spill] sm:$0xff]  ;;  %v3743_v27 = vld [vmem:[#allocation30_spill] sm:$0xff] }
 0x24e   :  { %1009 = vmatprep.subr.mxu0 %v2542_v29  ;;  %1080 = vmatprep.subr.mxu1 %v2544_v30  ;;  %v3744_v29 = vld [vmem:[#allocation31_spill] sm:$0xff]  ;;  %v3745_v30 = vld [vmem:[#allocation32_spill] sm:$0xff] }
 0x24f   :  { %1010 = vmatpush1.msra.mxu0 %v2548_v31  ;;  %1081 = vmatpush1.msra.mxu1 %v2550_v32  ;;  %v3746_v31 = vld [vmem:[#allocation33_spill] sm:$0xff]  ;;  %v3747_v32 = vmov 0.0  }
 0x250   :  { %1011 = vmatprep.subr.mxu0 %v2554_v33  ;;  %1082 = vmatprep.subr.mxu1 %v2556_v34  ;;  %v3748_v33 = vld [vmem:[#allocation34_spill] sm:$0xff]  ;;  %v3047_v34 = vld [vmem:[#allocation3 + $0x1e8] sm:$0xff] }
 0x251   :  { %1012 = vmatpush1.msra.mxu0 %v2562_v35  ;;  %1083 = vmatpush1.msra.mxu1 %v2564_v36  ;;  %3749 = vst [vmem:[#allocation14_spill] sm:$0xff] %v3047_v34  ;;  %v3050_v35 = vld [vmem:[#allocation3 + $0x1f8] sm:$0xff] }
 0x252   :  { %1013 = vmatprep.subr.mxu0 %v2573_v38  ;;  %1084 = vmatprep.subr.mxu1 %v2575_v39  ;;  %3750 = vst [vmem:[#allocation15_spill] sm:$0xff] %v3050_v35  ;;  %v3751_v36 = vld [vmem:[#allocation26_spill] sm:$0xff]  ;;  %v3752_v38 = vmov 0  }
 0x253   :  { %1014 = vmatpush1.msra.mxu0 %v2579_v40  ;;  %1085 = vmatpush1.msra.mxu1 %v2581_v41  ;;  %vm1171_vm6 = vcmp.eq.s32.totalorder %v3751_v36, 3  ;;  %v3753_v41 = vld [vmem:[#allocation39_spill] sm:$0xff]  ;;  %vm1355_vm8 = vcmp.eq.s32.totalorder %v3751_v36, 4  ;;  %vm1539_vm10 = vcmp.eq.s32.totalorder %v3751_v36, 5 }
 0x254   :  { %1015 = vmatprep.subr.mxu0 %v2585_v42  ;;  %1086 = vmatprep.subr.mxu1 %v2587_v43  ;;  %v1172_v39 = vsel %vm1171_vm6, 1, %v3752_v38 }
 0x255   :  { %1016 = vmatpush1.msra.mxu0 %v2593_v44  ;;  %1087 = vmatpush1.msra.mxu1 %v2595_v45  ;;  %v3754_v45 = vld [vmem:[#allocation41_spill] sm:$0xff] }
 0x256   :  { %1017 = vmatprep.subr.mxu0 %v2604_v47  ;;  %1088 = vmatprep.subr.mxu1 %v2606_v48 }
 0x257   :  { %1018 = vmatpush1.msra.mxu0 %v2610_v49  ;;  %1089 = vmatpush1.msra.mxu1 %v2612_v50  ;;  %v3755_v50 = vld [vmem:[#allocation40_spill] sm:$0xff] }
 0x258   :  { %1019 = vmatprep.subr.mxu0 %v2616_v51  ;;  %1090 = vmatprep.subr.mxu1 %v2618_v52 }
 0x259   :  { %1020 = vmatpush1.msra.mxu0 %v2624_v53  ;;  %1091 = vmatpush1.msra.mxu1 %v2626_v54  ;;  %v3756_v54 = vld [vmem:[#allocation42_spill] sm:$0xff] }
 0x25a   :  { %1021 = vmatprep.subr.mxu0 %v2635_v56  ;;  %1092 = vmatprep.subr.mxu1 %v2637_v57 }
 0x25b   :  { %1022 = vmatpush1.msra.mxu0 %v2641_v58  ;;  %1093 = vmatpush1.msra.mxu1 %v2643_v59 }
 0x25c   :  { %1023 = vmatprep.subr.mxu0 %v3701_v37  ;;  %1094 = vmatprep.subr.mxu1 %v3702_v60 }
 0x25d   :  { %1024 = vmatpush1.msra.mxu0 %v3730_v13  ;;  %1095 = vmatpush1.msra.mxu1 %v3731_v14 }
 0x25e   :  { %1025 = vmatprep.subr.mxu0 %v3732_v15  ;;  %1096 = vmatprep.subr.mxu1 %v3733_v16 }
 0x25f   :  { %1026 = vmatpush1.msra.mxu0 %v3734_v17  ;;  %1097 = vmatpush1.msra.mxu1 %v3735_v18 }
 0x260   :  { %1027 = vmatprep.subr.mxu0 %v3736_v20  ;;  %1098 = vmatprep.subr.mxu1 %v3737_v21 }
 0x261   :  { %1028 = vmatpush1.msra.mxu0 %v3738_v22  ;;  %1099 = vmatpush1.msra.mxu1 %v3739_v23 }
 0x262   :  { %1029 = vmatprep.subr.mxu0 %v3740_v24  ;;  %1100 = vmatprep.subr.mxu1 %v3741_v25 }
 0x263   :  { %1030 = vmatpush1.msra.mxu0 %v3742_v26  ;;  %1101 = vmatpush1.msra.mxu1 %v3743_v27 }
 0x264   :  { %1031 = vmatprep.subr.mxu0 %v3744_v29  ;;  %1102 = vmatprep.subr.mxu1 %v3745_v30 }
 0x265   :  { %1032 = vmatpush1.msra.mxu0 %v3746_v31  ;;  %1065 = vmatprep.mubr.f32.mxu0 %v3747_v32 }
 0x266   :  { %1103 = vmatpush1.msra.mxu1 %v3748_v33  ;;  %1136 = vmatprep.mubr.f32.mxu1 %v3747_v32 }
 0x267   :  { %1185 = vmatprep.subr.mxu0 %v3047_v34  ;;  %1256 = vmatprep.subr.mxu1 %v3050_v35 }
 0x268   :  { %1174 = vperm.xlu1 %2136, %v1172_v39   ;;  %v3066_v39 = vld [vmem:[#allocation3 + $0x1e0] sm:$0xff] }
 0x306   :  { %v883_v40 = vpop.f32.mrf.mxu0  ;;  %v954_v49 = vpop.f32.mrf.mxu1 }
 0x307   :  { %v959_v42 = vadd.f32 %v883_v40, %v3753_v41  ;;  %v961_v51 = vadd.f32 %v954_v49, %v3755_v50  ;;  %v3072_v40 = vld [vmem:[#allocation3 + $0x1c8] sm:$0xff]  ;;  %v3075_v41 = vld [vmem:[#allocation3 + $0x1d8] sm:$0xff]  ;;  %v3102_v50 = vld [vmem:[#allocation3 + $0x180] sm:$0xff] }
 0x308   :  { %v885_v43 = vpop.f32.mrf.mxu0  ;;  %v956_v52 = vpop.f32.mrf.mxu1  ;;  %v3099_v49 = vld [vmem:[#allocation3 + $0x198] sm:$0xff] }
 0x309   :  { %v2054_v44 = vmul.f32 -1.442695, %v959_v42  ;;  %v960_v47 = vadd.f32 %v885_v43, %v3754_v45  ;;  %v2056_v53 = vmul.f32 -1.442695, %v961_v51  ;;  %v962_v4 = vadd.f32 %v956_v52, %v3756_v54  ;;  %v3081_v42 = vld [vmem:[#allocation3 + $0x1d0] sm:$0xff]  ;;  %v3084_v43 = vld [vmem:[#allocation3 + $0x1a8] sm:$0xff] }
 0x30a   :  { %v3090_v45 = vld [vmem:[#allocation3 + $0x1a0] sm:$0xff]  ;;  %v3105_v51 = vld [vmem:[#allocation3 + $0x190] sm:$0xff]  ;;  %v3108_v52 = vld [vmem:[#allocation3 + $0x168] sm:$0xff] }
 0x30b   :  { %2169 = vpow2.f32 %v2054_v44  ;;  %v2055_v48 = vmul.f32 -1.442695, %v960_v47  ;;  %v3087_v44 = vld [vmem:[#allocation3 + $0x1b8] sm:$0xff]  ;;  %v3093_v47 = vld [vmem:[#allocation3 + $0x1b0] sm:$0xff]  ;;  %v3114_v54 = vld [vmem:[#allocation3 + $0x160] sm:$0xff] }
 0x30d   :  { %2171 = vpow2.f32 %v2055_v48  ;;  %v3096_v48 = vld [vmem:[#allocation3 + $0x188] sm:$0xff] }
 0x30e   :  { %2173 = vpow2.f32 %v2056_v53  ;;  %v3111_v53 = vld [vmem:[#allocation3 + $0x178] sm:$0xff] }
 0x30f   :  { %2175 = vtanh.f32 %v962_v4  ;;  %v3117_v4 = vld [vmem:[#allocation3 + $0x170] sm:$0xff] }
 0x318   :  { %v2170_v55 = vpop.eup %2169 }
 0x319   :  { %v972_v9 = vadd.f32 1.0, %v2170_v55  ;;  %v3120_v55 = vld [vmem:[#allocation3 + $0x148] sm:$0xff] }
 0x31a   :  { %v2172_v0 = vpop.eup %2171 }
 0x31b   :  { %2177 = vrcp.f32 %v972_v9  ;;  %v973_v2 = vadd.f32 1.0, %v2172_v0  ;;  %v2174_v1 = vpop.eup %2173  ;;  %v3123_v9 = vld [vmem:[#allocation3 + $0x158] sm:$0xff]  ;;  %v3126_v0 = vld [vmem:[#allocation3 + $0x140] sm:$0xff] }
 0x31c   :  { %v2176_v46 = vpop.eup %2175  ;;  %v974_v5 = vadd.f32 1.0, %v2174_v1  ;;  %v3132_v1 = vld [vmem:[#allocation3 + $0x128] sm:$0xff] }
 0x31d   :  { %2179 = vrcp.f32 %v973_v2  ;;  %v3129_v2 = vld [vmem:[#allocation3 + $0x150] sm:$0xff] }
 0x31e   :  { %2181 = vrcp.f32 %v974_v5  ;;  %v3147_v5 = vld [vmem:[#allocation3 + $0x118] sm:$0xff] }
 0x31f   :  { %3757 = vst [vmem:[#allocation12_spill] sm:$0xff] %v3147_v5 }
 0x328   :  { %v2178_v11 = vpop.eup %2177 }
 0x329   :  { %v983_v8 = vmul.f32 %v2178_v11, %v2176_v46  ;;  %v3135_v46 = vld [vmem:[#allocation3 + $0x138] sm:$0xff]  ;;  %v3138_v11 = vld [vmem:[#allocation3 + $0x120] sm:$0xff] }
 0x32a   :  { %v2180_v10 = vpop.eup %2179 }
 0x32b   :  { %v982_v28 = vmul.f32 %v2180_v10, %v2977_v12  ;;  %v2182_v19 = vpop.eup %2181  ;;  %v3069_v12 = vld [vmem:[#allocation3 + $0x1f0] sm:$0xff]  ;;  %v3144_v10 = vld [vmem:[#allocation3 + $0x108] sm:$0xff] }
 0x32d   :  { %v3060_v62 = vadd.f32 %v983_v8, %v982_v28  ;;  %v3141_v8 = vld [vmem:[#allocation3 + $0x130] sm:$0xff]  ;;  %v3150_v28 = vld [vmem:[#allocation3 + $0x100] sm:$0xff] }
 0x32e   :  { %3758 = vst [vmem:[#allocation13_spill] sm:$0xff] %v3150_v28 }
 0x32f   :  { %2183 = vtanh.f32 %v3060_v62 }
 0x33c   :  { %v2184_v6 = vpop.eup %2183 }
 0x33d   :  { %v986_v63 = vmul.f32 %v2184_v6, %v2182_v19  ;;  %v3156_v19 = vld [vmem:[#allocation3 + $0xe8] sm:$0xff]  ;;  %v3159_v6 = vld [vmem:[#allocation3 + $0xf8] sm:$0xff] }
 0x33e   :  { %3760 = vst [vmem:[#allocation37_spill] sm:$0xff] %v3156_v19  ;;  %3761 = vst [vmem:[#allocation36_spill] sm:$0xff] %v3159_v6 }
 0x33f   :  { %v3064_v3 = vsel %vm992_vm7, %v986_v63, %v2981_v7  ;;  %1066 = vmatmul.mubr.f32.vlgmr.msra.gmra.mxu0 %v986_v63  ;;  %1137 = vmatmul.mubr.f32.vlgmr.msra.gmra.mxu1 %v986_v63  ;;  %v3078_v7 = vld [vmem:[#allocation3 + $0x1c0] sm:$0xff] }
 0x340   :  { %1186 = vmatpush1.msra.mxu0 %v3066_v39  ;;  %1257 = vmatpush1.msra.mxu1 %v3069_v12  ;;  %v3162_v63 = vld [vmem:[#allocation3 + $0xe0] sm:$0xff] }
 0x341   :  { %1187 = vmatprep.subr.mxu0 %v3072_v40  ;;  %1258 = vmatprep.subr.mxu1 %v3075_v41 }
 0x342   :  { %1188 = vmatpush1.msra.mxu0 %v3078_v7  ;;  %1259 = vmatpush1.msra.mxu1 %v3081_v42 }
 0x343   :  { %1189 = vmatprep.subr.mxu0 %v3084_v43  ;;  %1260 = vmatprep.subr.mxu1 %v3087_v44 }
 0x344   :  { %1190 = vmatpush1.msra.mxu0 %v3090_v45  ;;  %1261 = vmatpush1.msra.mxu1 %v3093_v47 }
 0x345   :  { %1191 = vmatprep.subr.mxu0 %v3096_v48  ;;  %1262 = vmatprep.subr.mxu1 %v3099_v49 }
 0x346   :  { %1192 = vmatpush1.msra.mxu0 %v3102_v50  ;;  %1263 = vmatpush1.msra.mxu1 %v3105_v51 }
 0x347   :  { %1193 = vmatprep.subr.mxu0 %v3108_v52  ;;  %1264 = vmatprep.subr.mxu1 %v3111_v53 }
 0x348   :  { %1194 = vmatpush1.msra.mxu0 %v3114_v54  ;;  %1265 = vmatpush1.msra.mxu1 %v3117_v4 }
 0x349   :  { %1195 = vmatprep.subr.mxu0 %v3120_v55  ;;  %1266 = vmatprep.subr.mxu1 %v3123_v9 }
 0x34a   :  { %1196 = vmatpush1.msra.mxu0 %v3126_v0  ;;  %1267 = vmatpush1.msra.mxu1 %v3129_v2 }
 0x34b   :  { %1197 = vmatprep.subr.mxu0 %v3132_v1  ;;  %1268 = vmatprep.subr.mxu1 %v3135_v46 }
 0x34c   :  { %1198 = vmatpush1.msra.mxu0 %v3138_v11  ;;  %1269 = vmatpush1.msra.mxu1 %v3141_v8 }
 0x34d   :  { %1199 = vmatprep.subr.mxu0 %v3144_v10  ;;  %1270 = vmatprep.subr.mxu1 %v3147_v5  ;;  %v3165_v5 = vld [vmem:[#allocation3 + $0xf0] sm:$0xff] }
 0x34e   :  { %1200 = vmatpush1.msra.mxu0 %v3150_v28  ;;  %1271 = vmatpush1.msra.mxu1 %v3153_v61  ;;  %v3168_v28 = vld [vmem:[#allocation3 + $0xc8] sm:$0xff]  ;;  %v3171_v61 = vld [vmem:[#allocation3 + $0xd8] sm:$0xff] }
 0x34f   :  { %1201 = vmatprep.subr.mxu0 %v3156_v19  ;;  %1272 = vmatprep.subr.mxu1 %v3159_v6  ;;  %v3174_v19 = vld [vmem:[#allocation3 + $0xc0] sm:$0xff]  ;;  %v3177_v6 = vld [vmem:[#allocation3 + $0xd0] sm:$0xff] }
 0x350   :  { %1202 = vmatpush1.msra.mxu0 %v3162_v63  ;;  %1273 = vmatpush1.msra.mxu1 %v3165_v5 }
 0x351   :  { %1203 = vmatprep.subr.mxu0 %v3168_v28  ;;  %1274 = vmatprep.subr.mxu1 %v3171_v61 }
 0x352   :  { %1204 = vmatpush1.msra.mxu0 %v3174_v19  ;;  %1275 = vmatpush1.msra.mxu1 %v3177_v6 }
 0x353   :  { %1205 = vmatprep.subr.mxu0 %v2635_v56  ;;  %1276 = vmatprep.subr.mxu1 %v2637_v57  ;;  %v1356_v56 = vsel %vm1355_vm8, 1, %v3752_v38 }
 0x354   :  { %1206 = vmatpush1.msra.mxu0 %v2641_v58  ;;  %1277 = vmatpush1.msra.mxu1 %v2643_v59  ;;  %v3762_v58 = vld [vmem:[#allocation43_spill] sm:$0xff] }
 0x355   :  { %1207 = vmatprep.subr.mxu0 %v3701_v37  ;;  %1278 = vmatprep.subr.mxu1 %v3702_v60 }
 0x356   :  { %1208 = vmatpush1.msra.mxu0 %v3730_v13  ;;  %1279 = vmatpush1.msra.mxu1 %v3731_v14  ;;  %v3763_v13 = vld [vmem:[#allocation45_spill] sm:$0xff] }
 0x357   :  { %1209 = vmatprep.subr.mxu0 %v3732_v15  ;;  %1280 = vmatprep.subr.mxu1 %v3733_v16 }
 0x358   :  { %1210 = vmatpush1.msra.mxu0 %v3734_v17  ;;  %1281 = vmatpush1.msra.mxu1 %v3735_v18  ;;  %v3764_v17 = vld [vmem:[#allocation44_spill] sm:$0xff] }
 0x359   :  { %1211 = vmatprep.subr.mxu0 %v3736_v20  ;;  %1282 = vmatprep.subr.mxu1 %v3737_v21 }
 0x35a   :  { %1212 = vmatpush1.msra.mxu0 %v3738_v22  ;;  %1283 = vmatpush1.msra.mxu1 %v3739_v23  ;;  %v3765_v22 = vld [vmem:[#allocation46_spill] sm:$0xff] }
 0x35b   :  { %1213 = vmatprep.subr.mxu0 %v3740_v24  ;;  %1284 = vmatprep.subr.mxu1 %v3741_v25 }
 0x35c   :  { %1214 = vmatpush1.msra.mxu0 %v3742_v26  ;;  %1285 = vmatpush1.msra.mxu1 %v3743_v27 }
 0x35d   :  { %1215 = vmatprep.subr.mxu0 %v3744_v29  ;;  %1286 = vmatprep.subr.mxu1 %v3745_v30 }
 0x35e   :  { %1216 = vmatpush1.msra.mxu0 %v3746_v31  ;;  %1249 = vmatprep.mubr.f32.mxu0 %v3747_v32 }
 0x35f   :  { %1287 = vmatpush1.msra.mxu1 %v3748_v33  ;;  %1320 = vmatprep.mubr.f32.mxu1 %v3747_v32 }
 0x360   :  { %1369 = vmatprep.subr.mxu0 %v3047_v34  ;;  %1440 = vmatprep.subr.mxu1 %v3050_v35 }
 0x361   :  { %1358 = vperm.xlu0 %2135, %v1356_v56  }
 0x3ff   :  { %v1067_v57 = vpop.f32.mrf.mxu0  ;;  %v1138_v16 = vpop.f32.mrf.mxu1 }
 0x400   :  { %v1143_v59 = vadd.f32 %v1067_v57, %v3762_v58  ;;  %v1145_v18 = vadd.f32 %v1138_v16, %v3764_v17  ;;  %v3768_v16 = vld [vmem:[#allocation35_spill] sm:$0xff]  ;;  %v3769_v17 = vld [vmem:[#allocation37_spill] sm:$0xff] }
 0x401   :  { %v1069_v37 = vpop.f32.mrf.mxu0  ;;  %v1140_v20 = vpop.f32.mrf.mxu1 }
 0x402   :  { %v2057_v60 = vmul.f32 -1.442695, %v1143_v59  ;;  %v1144_v14 = vadd.f32 %v1069_v37, %v3763_v13  ;;  %v2059_v21 = vmul.f32 -1.442695, %v1145_v18  ;;  %v1146_v23 = vadd.f32 %v1140_v20, %v3765_v22  ;;  %v1175_v37 = vpop.permute.xlu1 %1174  ;;  %v3770_v18 = vld [vmem:[#allocation36_spill] sm:$0xff]  ;;  %v3265_v22 = vld [vmem:[#allocation3 + $0xa0] sm:$0xff] }
 0x403   :  { %vm1176_vm9 = vcmp.eq.s32.totalorder %v1175_v37, 1  ;;  %v3259_v20 = vld [vmem:[#allocation3 + $0xa8] sm:$0xff]  ;;  %v3304_v37 = vld [vmem:[#allocation3 + $0x50] sm:$0xff] }
 0x404   :  { %2185 = vpow2.f32 %v2057_v60  ;;  %v2058_v15 = vmul.f32 -1.442695, %v1144_v14  ;;  %3780 = vst [vmem:[#allocation24_spill] sm:$0xff] %v3304_v37 }
 0x406   :  { %2187 = vpow2.f32 %v2058_v15 }
 0x407   :  { %2189 = vpow2.f32 %v2059_v21  ;;  %v3262_v21 = vld [vmem:[#allocation3 + $0xb8] sm:$0xff] }
 0x408   :  { %2191 = vtanh.f32 %v1146_v23  ;;  %v3268_v23 = vld [vmem:[#allocation3 + $0xb0] sm:$0xff] }
 0x411   :  { %v2186_v24 = vpop.eup %2185 }
 0x412   :  { %v1156_v25 = vadd.f32 1.0, %v2186_v24  ;;  %v3271_v24 = vld [vmem:[#allocation3 + $0x88] sm:$0xff] }
 0x413   :  { %v2188_v26 = vpop.eup %2187 }
 0x414   :  { %2193 = vrcp.f32 %v1156_v25  ;;  %v1157_v27 = vadd.f32 1.0, %v2188_v26  ;;  %v2190_v29 = vpop.eup %2189  ;;  %v3274_v25 = vld [vmem:[#allocation3 + $0x98] sm:$0xff]  ;;  %v3277_v26 = vld [vmem:[#allocation3 + $0x80] sm:$0xff] }
 0x415   :  { %v2192_v30 = vpop.eup %2191  ;;  %v1158_v57 = vadd.f32 1.0, %v2190_v29  ;;  %3771 = vst [vmem:[#allocation38_spill] sm:$0xff] %v3277_v26  ;;  %v3283_v29 = vld [vmem:[#allocation3 + $0x68] sm:$0xff] }
 0x416   :  { %2195 = vrcp.f32 %v1157_v27  ;;  %v3280_v27 = vld [vmem:[#allocation3 + $0x90] sm:$0xff]  ;;  %3773 = vst [vmem:[#allocation17_spill] sm:$0xff] %v3283_v29 }
 0x417   :  { %2197 = vrcp.f32 %v1158_v57  ;;  %3772 = vst [vmem:[#allocation16_spill] sm:$0xff] %v3280_v27  ;;  %v3298_v57 = vld [vmem:[#allocation3 + $0x58] sm:$0xff] }
 0x418   :  { %3778 = vst [vmem:[#allocation22_spill] sm:$0xff] %v3298_v57 }
 0x421   :  { %v2194_v31 = vpop.eup %2193 }
 0x422   :  { %v1167_v33 = vmul.f32 %v2194_v31, %v2192_v30  ;;  %v3286_v30 = vld [vmem:[#allocation3 + $0x78] sm:$0xff]  ;;  %v3289_v31 = vld [vmem:[#allocation3 + $0x60] sm:$0xff] }
 0x423   :  { %v2196_v56 = vpop.eup %2195  ;;  %3774 = vst [vmem:[#allocation18_spill] sm:$0xff] %v3286_v30  ;;  %3775 = vst [vmem:[#allocation19_spill] sm:$0xff] %v3289_v31 }
 0x424   :  { %v1166_v58 = vmul.f32 %v2196_v56, %v3060_v62  ;;  %v2198_v60 = vpop.eup %2197  ;;  %v3766_v62 = vld [vmem:[#allocation12_spill] sm:$0xff] }
 0x425   :  { %v3295_v56 = vld [vmem:[#allocation3 + $0x48] sm:$0xff] }
 0x426   :  { %v3215_v59 = vadd.f32 %v1167_v33, %v1166_v58  ;;  %v3292_v33 = vld [vmem:[#allocation3 + $0x70] sm:$0xff]  ;;  %3777 = vst [vmem:[#allocation21_spill] sm:$0xff] %v3295_v56  ;;  %v3301_v58 = vld [vmem:[#allocation3 + $0x40] sm:$0xff] }
 0x427   :  { %3776 = vst [vmem:[#allocation20_spill] sm:$0xff] %v3292_v33  ;;  %3779 = vst [vmem:[#allocation23_spill] sm:$0xff] %v3301_v58 }
 0x428   :  { %2199 = vtanh.f32 %v3215_v59 }
 0x435   :  { %v2200_v13 = vpop.eup %2199 }
 0x436   :  { %v1170_v14 = vmul.f32 %v2200_v13, %v2198_v60  ;;  %v3307_v60 = vld [vmem:[#allocation3 + $0x28] sm:$0xff]  ;;  %v3310_v13 = vld [vmem:[#allocation3 + $0x38] sm:$0xff] }
 0x437   :  { %3781 = vst [vmem:[#allocation25_spill] sm:$0xff] %v3307_v60  ;;  %3782 = vst [vmem:[#allocation27_spill] sm:$0xff] %v3310_v13 }
 0x438   :  { %v3219_v15 = vsel %vm1176_vm9, %v1170_v14, %v3064_v3  ;;  %1250 = vmatmul.mubr.f32.vlgmr.msra.gmra.mxu0 %v1170_v14  ;;  %1321 = vmatmul.mubr.f32.vlgmr.msra.gmra.mxu1 %v1170_v14  ;;  %v3767_v3 = vld [vmem:[#allocation13_spill] sm:$0xff]  ;;  %v3313_v14 = vld [vmem:[#allocation3 + $0x20] sm:$0xff] }
 0x439   :  { %1370 = vmatpush1.msra.mxu0 %v3066_v39  ;;  %1441 = vmatpush1.msra.mxu1 %v3069_v12  ;;  %3783 = vst [vmem:[#allocation28_spill] sm:$0xff] %v3313_v14 }
 0x43a   :  { %1371 = vmatprep.subr.mxu0 %v3072_v40  ;;  %1442 = vmatprep.subr.mxu1 %v3075_v41 }
 0x43b   :  { %1372 = vmatpush1.msra.mxu0 %v3078_v7  ;;  %1443 = vmatpush1.msra.mxu1 %v3081_v42 }
 0x43c   :  { %1373 = vmatprep.subr.mxu0 %v3084_v43  ;;  %1444 = vmatprep.subr.mxu1 %v3087_v44 }
 0x43d   :  { %1374 = vmatpush1.msra.mxu0 %v3090_v45  ;;  %1445 = vmatpush1.msra.mxu1 %v3093_v47 }
 0x43e   :  { %1375 = vmatprep.subr.mxu0 %v3096_v48  ;;  %1446 = vmatprep.subr.mxu1 %v3099_v49 }
 0x43f   :  { %1376 = vmatpush1.msra.mxu0 %v3102_v50  ;;  %1447 = vmatpush1.msra.mxu1 %v3105_v51 }
 0x440   :  { %1377 = vmatprep.subr.mxu0 %v3108_v52  ;;  %1448 = vmatprep.subr.mxu1 %v3111_v53 }
 0x441   :  { %1378 = vmatpush1.msra.mxu0 %v3114_v54  ;;  %1449 = vmatpush1.msra.mxu1 %v3117_v4 }
 0x442   :  { %1379 = vmatprep.subr.mxu0 %v3120_v55  ;;  %1450 = vmatprep.subr.mxu1 %v3123_v9 }
 0x443   :  { %1380 = vmatpush1.msra.mxu0 %v3126_v0  ;;  %1451 = vmatpush1.msra.mxu1 %v3129_v2 }
 0x444   :  { %1381 = vmatprep.subr.mxu0 %v3132_v1  ;;  %1452 = vmatprep.subr.mxu1 %v3135_v46 }
 0x445   :  { %1382 = vmatpush1.msra.mxu0 %v3138_v11  ;;  %1453 = vmatpush1.msra.mxu1 %v3141_v8 }
 0x446   :  { %1383 = vmatprep.subr.mxu0 %v3144_v10  ;;  %1454 = vmatprep.subr.mxu1 %v3766_v62 }
 0x447   :  { %1384 = vmatpush1.msra.mxu0 %v3767_v3  ;;  %1455 = vmatpush1.msra.mxu1 %v3768_v16 }
 0x448   :  { %1385 = vmatprep.subr.mxu0 %v3769_v17  ;;  %1456 = vmatprep.subr.mxu1 %v3770_v18 }
 0x449   :  { %1386 = vmatpush1.msra.mxu0 %v3162_v63  ;;  %1457 = vmatpush1.msra.mxu1 %v3165_v5 }
 0x44a   :  { %1387 = vmatprep.subr.mxu0 %v3168_v28  ;;  %1458 = vmatprep.subr.mxu1 %v3171_v61 }
 0x44b   :  { %1388 = vmatpush1.msra.mxu0 %v3174_v19  ;;  %1459 = vmatpush1.msra.mxu1 %v3177_v6 }
 0x44c   :  { %1389 = vmatprep.subr.mxu0 %v3259_v20  ;;  %1460 = vmatprep.subr.mxu1 %v3262_v21 }
 0x44d   :  { %1390 = vmatpush1.msra.mxu0 %v3265_v22  ;;  %1461 = vmatpush1.msra.mxu1 %v3268_v23 }
 0x44e   :  { %1391 = vmatprep.subr.mxu0 %v3271_v24  ;;  %1462 = vmatprep.subr.mxu1 %v3274_v25 }
 0x44f   :  { %1392 = vmatpush1.msra.mxu0 %v3277_v26  ;;  %1463 = vmatpush1.msra.mxu1 %v3280_v27  ;;  %v3792_v27 = vld [vmem:[#allocation50_spill] sm:$0xff] }
 0x450   :  { %1393 = vmatprep.subr.mxu0 %v3283_v29  ;;  %1464 = vmatprep.subr.mxu1 %v3286_v30  ;;  %v3791_v30 = vld [vmem:[#allocation48_spill] sm:$0xff] }
 0x451   :  { %1394 = vmatpush1.msra.mxu0 %v3289_v31  ;;  %1465 = vmatpush1.msra.mxu1 %v3292_v33  ;;  %v3790_v33 = vld [vmem:[#allocation49_spill] sm:$0xff] }
 0x452   :  { %1395 = vmatprep.subr.mxu0 %v3295_v56  ;;  %1466 = vmatprep.subr.mxu1 %v3298_v57  ;;  %v3316_v57 = vld [vmem:[#allocation3 + $0x30] sm:$0xff] }
 0x453   :  { %1396 = vmatpush1.msra.mxu0 %v3301_v58  ;;  %1467 = vmatpush1.msra.mxu1 %v3304_v37  ;;  %3784 = vst [vmem:[#allocation29_spill] sm:$0xff] %v3316_v57  ;;  %v3319_v58 = vld [vmem:[#allocation3 + $0x8] sm:$0xff]  ;;  %v3322_v37 = vld [vmem:[#allocation3 + $0x18] sm:$0xff] }
 0x454   :  { %1397 = vmatprep.subr.mxu0 %v3307_v60  ;;  %1468 = vmatprep.subr.mxu1 %v3310_v13  ;;  %3785 = vst [vmem:[#allocation30_spill] sm:$0xff] %v3319_v58  ;;  %3786 = vst [vmem:[#allocation31_spill] sm:$0xff] %v3322_v37  ;;  %v3325_v60 = vld [vmem:[#allocation3] sm:$0xff]  ;;  %v3329_v13 = vld [vmem:[#allocation3 + $0x10] sm:$0xff] }
 0x455   :  { %1398 = vmatpush1.msra.mxu0 %v3313_v14  ;;  %1469 = vmatpush1.msra.mxu1 %v3316_v57  ;;  %3787 = vst [vmem:[#allocation32_spill] sm:$0xff] %v3325_v60  ;;  %3788 = vst [vmem:[#allocation33_spill] sm:$0xff] %v3329_v13  ;;  %v3789_v57 = vld [vmem:[#allocation47_spill] sm:$0xff] }
 0x456   :  { %1399 = vmatprep.subr.mxu0 %v3319_v58  ;;  %1470 = vmatprep.subr.mxu1 %v3322_v37  ;;  %v1540_v37 = vsel %vm1539_vm10, 1, %v3752_v38 }
 0x457   :  { %1400 = vmatpush1.msra.mxu0 %v3325_v60  ;;  %1433 = vmatprep.mubr.f32.mxu0 %v3747_v32 }
 0x458   :  { %1471 = vmatpush1.msra.mxu1 %v3329_v13  ;;  %1504 = vmatprep.mubr.f32.mxu1 %v3747_v32 }
 0x459   :  { %1553 = vmatprep.subr.mxu0 %v3047_v34  ;;  %1624 = vmatprep.subr.mxu1 %v3050_v35 }
 0x45a   :  { %1542 = vperm.xlu1 %2136, %v1540_v37  }
 0x4f8   :  { %v1251_v58 = vpop.f32.mrf.mxu0  ;;  %v1322_v32 = vpop.f32.mrf.mxu1 }
 0x4f9   :  { %v1327_v60 = vadd.f32 %v1251_v58, %v3789_v57  ;;  %v1329_v34 = vadd.f32 %v1322_v32, %v3791_v30 }
 0x4fa   :  { %v1253_v14 = vpop.f32.mrf.mxu0  ;;  %v1324_v29 = vpop.f32.mrf.mxu1 }
 0x4fb   :  { %v2060_v56 = vmul.f32 -1.442695, %v1327_v60  ;;  %v1328_v31 = vadd.f32 %v1253_v14, %v3790_v33  ;;  %v2062_v35 = vmul.f32 -1.442695, %v1329_v34  ;;  %v1330_v36 = vadd.f32 %v1324_v29, %v3792_v27  ;;  %v1359_v34 = vpop.permute.xlu0 %1358  ;;  %v3795_v27 = vld [vmem:[#allocation17_spill] sm:$0xff]  ;;  %v3796_v29 = vld [vmem:[#allocation18_spill] sm:$0xff] }
 0x4fc   :  { %vm1360_vm11 = vcmp.eq.s32.totalorder %v1359_v34, 1  ;;  %v3797_v14 = vld [vmem:[#allocation19_spill] sm:$0xff]  ;;  %v3807_v34 = vld [vmem:[#allocation30_spill] sm:$0xff] }
 0x4fd   :  { %2201 = vpow2.f32 %v2060_v56  ;;  %v2061_v13 = vmul.f32 -1.442695, %v1328_v31 }
 0x4ff   :  { %2203 = vpow2.f32 %v2061_v13 }
 0x500   :  { %2205 = vpow2.f32 %v2062_v35 }
 0x501   :  { %2207 = vtanh.f32 %v1330_v36 }
 0x50a   :  { %v2202_v26 = vpop.eup %2201 }
 0x50b   :  { %v1340_v38 = vadd.f32 1.0, %v2202_v26 }
 0x50c   :  { %v2204_v37 = vpop.eup %2203 }
 0x50d   :  { %2209 = vrcp.f32 %v1340_v38  ;;  %v1341_v57 = vadd.f32 1.0, %v2204_v37  ;;  %v2206_v58 = vpop.eup %2205  ;;  %v3798_v37 = vld [vmem:[#allocation20_spill] sm:$0xff] }
 0x50e   :  { %v2208_v33 = vpop.eup %2207  ;;  %v1342_v13 = vadd.f32 1.0, %v2206_v58  ;;  %v3800_v58 = vld [vmem:[#allocation22_spill] sm:$0xff] }
 0x50f   :  { %2211 = vrcp.f32 %v1341_v57  ;;  %v3799_v57 = vld [vmem:[#allocation21_spill] sm:$0xff] }
 0x510   :  { %2213 = vrcp.f32 %v1342_v13  ;;  %v3805_v13 = vld [vmem:[#allocation28_spill] sm:$0xff] }
 0x51a   :  { %v2210_v56 = vpop.eup %2209 }
 0x51b   :  { %v1351_v31 = vmul.f32 %v2210_v56, %v2208_v33  ;;  %v3801_v33 = vld [vmem:[#allocation23_spill] sm:$0xff]  ;;  %v3802_v56 = vld [vmem:[#allocation24_spill] sm:$0xff] }
 0x51c   :  { %v2212_v60 = vpop.eup %2211 }
 0x51d   :  { %v1350_v32 = vmul.f32 %v2212_v60, %v3215_v59  ;;  %v2214_v35 = vpop.eup %2213  ;;  %v3793_v59 = vld [vmem:[#allocation38_spill] sm:$0xff]  ;;  %v3804_v60 = vld [vmem:[#allocation27_spill] sm:$0xff] }
 0x51f   :  { %v3342_v30 = vadd.f32 %v1351_v31, %v1350_v32  ;;  %v3803_v31 = vld [vmem:[#allocation25_spill] sm:$0xff] }
 0x520   :  { %v3806_v32 = vld [vmem:[#allocation29_spill] sm:$0xff] }
 0x521   :  { %2215 = vtanh.f32 %v3342_v30 }
 0x52e   :  { %v2216_v26 = vpop.eup %2215 }
 0x52f   :  { %v1354_v36 = vmul.f32 %v2216_v26, %v2214_v35  ;;  %v3808_v35 = vld [vmem:[#allocation31_spill] sm:$0xff]  ;;  %v3809_v26 = vld [vmem:[#allocation32_spill] sm:$0xff] }
 0x531   :  { %v3346_v38 = vsel %vm1360_vm11, %v1354_v36, %v3219_v15  ;;  %1434 = vmatmul.mubr.f32.vlgmr.msra.gmra.mxu0 %v1354_v36  ;;  %1505 = vmatmul.mubr.f32.vlgmr.msra.gmra.mxu1 %v1354_v36  ;;  %v3794_v15 = vld [vmem:[#allocation16_spill] sm:$0xff]  ;;  %v3810_v36 = vmov 0.0  }
 0x532   :  { %1554 = vmatpush1.msra.mxu0 %v3066_v39  ;;  %1625 = vmatpush1.msra.mxu1 %v3069_v12 }
 0x533   :  { %1555 = vmatprep.subr.mxu0 %v3072_v40  ;;  %1626 = vmatprep.subr.mxu1 %v3075_v41 }
 0x534   :  { %1556 = vmatpush1.msra.mxu0 %v3078_v7  ;;  %1627 = vmatpush1.msra.mxu1 %v3081_v42 }
 0x535   :  { %1557 = vmatprep.subr.mxu0 %v3084_v43  ;;  %1628 = vmatprep.subr.mxu1 %v3087_v44 }
 0x536   :  { %1558 = vmatpush1.msra.mxu0 %v3090_v45  ;;  %1629 = vmatpush1.msra.mxu1 %v3093_v47 }
 0x537   :  { %1559 = vmatprep.subr.mxu0 %v3096_v48  ;;  %1630 = vmatprep.subr.mxu1 %v3099_v49 }
 0x538   :  { %1560 = vmatpush1.msra.mxu0 %v3102_v50  ;;  %1631 = vmatpush1.msra.mxu1 %v3105_v51 }
 0x539   :  { %1561 = vmatprep.subr.mxu0 %v3108_v52  ;;  %1632 = vmatprep.subr.mxu1 %v3111_v53 }
 0x53a   :  { %1562 = vmatpush1.msra.mxu0 %v3114_v54  ;;  %1633 = vmatpush1.msra.mxu1 %v3117_v4 }
 0x53b   :  { %1563 = vmatprep.subr.mxu0 %v3120_v55  ;;  %1634 = vmatprep.subr.mxu1 %v3123_v9 }
 0x53c   :  { %1564 = vmatpush1.msra.mxu0 %v3126_v0  ;;  %1635 = vmatpush1.msra.mxu1 %v3129_v2 }
 0x53d   :  { %1565 = vmatprep.subr.mxu0 %v3132_v1  ;;  %1636 = vmatprep.subr.mxu1 %v3135_v46 }
 0x53e   :  { %1566 = vmatpush1.msra.mxu0 %v3138_v11  ;;  %1637 = vmatpush1.msra.mxu1 %v3141_v8 }
 0x53f   :  { %1567 = vmatprep.subr.mxu0 %v3144_v10  ;;  %1638 = vmatprep.subr.mxu1 %v3766_v62 }
 0x540   :  { %1568 = vmatpush1.msra.mxu0 %v3767_v3  ;;  %1639 = vmatpush1.msra.mxu1 %v3768_v16 }
 0x541   :  { %1569 = vmatprep.subr.mxu0 %v3769_v17  ;;  %1640 = vmatprep.subr.mxu1 %v3770_v18 }
 0x542   :  { %1570 = vmatpush1.msra.mxu0 %v3162_v63  ;;  %1641 = vmatpush1.msra.mxu1 %v3165_v5 }
 0x543   :  { %1571 = vmatprep.subr.mxu0 %v3168_v28  ;;  %1642 = vmatprep.subr.mxu1 %v3171_v61 }
 0x544   :  { %1572 = vmatpush1.msra.mxu0 %v3174_v19  ;;  %1643 = vmatpush1.msra.mxu1 %v3177_v6 }
 0x545   :  { %1573 = vmatprep.subr.mxu0 %v3259_v20  ;;  %1644 = vmatprep.subr.mxu1 %v3262_v21 }
 0x546   :  { %1574 = vmatpush1.msra.mxu0 %v3265_v22  ;;  %1645 = vmatpush1.msra.mxu1 %v3268_v23 }
 0x547   :  { %1575 = vmatprep.subr.mxu0 %v3271_v24  ;;  %1646 = vmatprep.subr.mxu1 %v3274_v25 }
 0x548   :  { %1576 = vmatpush1.msra.mxu0 %v3793_v59  ;;  %1647 = vmatpush1.msra.mxu1 %v3794_v15  ;;  %v3819_v15 = vld [vmem:[#allocation54_spill] sm:$0xff] }
 0x549   :  { %1577 = vmatprep.subr.mxu0 %v3795_v27  ;;  %1648 = vmatprep.subr.mxu1 %v3796_v29  ;;  %v3818_v29 = vld [vmem:[#allocation52_spill] sm:$0xff] }
 0x54a   :  { %1578 = vmatpush1.msra.mxu0 %v3797_v14  ;;  %1649 = vmatpush1.msra.mxu1 %v3798_v37  ;;  %v3817_v37 = vld [vmem:[#allocation53_spill] sm:$0xff] }
 0x54b   :  { %1579 = vmatprep.subr.mxu0 %v3799_v57  ;;  %1650 = vmatprep.subr.mxu1 %v3800_v58  ;;  %v3811_v58 = vld [vmem:[#allocation33_spill] sm:$0xff] }
 0x54c   :  { %1580 = vmatpush1.msra.mxu0 %v3801_v33  ;;  %1651 = vmatpush1.msra.mxu1 %v3802_v56  ;;  %v3812_v56 = vld [vmem:[#allocation14_spill] sm:$0xff]  ;;  %v3816_v33 = vld [vmem:[#allocation51_spill] sm:$0xff] }
 0x54d   :  { %1581 = vmatprep.subr.mxu0 %v3803_v31  ;;  %1652 = vmatprep.subr.mxu1 %v3804_v60  ;;  %v3813_v31 = vld [vmem:[#allocation15_spill] sm:$0xff]  ;;  %v3814_v60 = vld [vmem:[#allocation26_spill] sm:$0xff] }
 0x54e   :  { %1582 = vmatpush1.msra.mxu0 %v3805_v13  ;;  %1653 = vmatpush1.msra.mxu1 %v3806_v32  ;;  %vm1723_vm12 = vcmp.eq.s32.totalorder %v3814_v60, 6  ;;  %v3815_v13 = vmov 0  }
 0x54f   :  { %1583 = vmatprep.subr.mxu0 %v3807_v34  ;;  %1654 = vmatprep.subr.mxu1 %v3808_v35  ;;  %v1724_v32 = vsel %vm1723_vm12, 1, %v3815_v13 }
 0x550   :  { %1584 = vmatpush1.msra.mxu0 %v3809_v26  ;;  %1617 = vmatprep.mubr.f32.mxu0 %v3810_v36 }
 0x551   :  { %1655 = vmatpush1.msra.mxu1 %v3811_v58  ;;  %1688 = vmatprep.mubr.f32.mxu1 %v3810_v36 }
 0x552   :  { %1737 = vmatprep.subr.mxu0 %v3812_v56  ;;  %1808 = vmatprep.subr.mxu1 %v3813_v31 }
 0x553   :  { %1726 = vperm.xlu0 %2135, %v1724_v32  }
 0x5f1   :  { %v1435_v34 = vpop.f32.mrf.mxu0  ;;  %v1506_v36 = vpop.f32.mrf.mxu1 }
 0x5f2   :  { %v1511_v35 = vadd.f32 %v1435_v34, %v3816_v33  ;;  %v1513_v56 = vadd.f32 %v1506_v36, %v3818_v29 }
 0x5f3   :  { %v1437_v57 = vpop.f32.mrf.mxu0  ;;  %v1508_v27 = vpop.f32.mrf.mxu1 }
 0x5f4   :  { %v2063_v26 = vmul.f32 -1.442695, %v1511_v35  ;;  %v1512_v14 = vadd.f32 %v1437_v57, %v3817_v37  ;;  %v2065_v31 = vmul.f32 -1.442695, %v1513_v56  ;;  %v1514_v60 = vadd.f32 %v1508_v27, %v3819_v15 }
 0x5f6   :  { %2217 = vpow2.f32 %v2063_v26  ;;  %v2064_v58 = vmul.f32 -1.442695, %v1512_v14 }
 0x5f8   :  { %2219 = vpow2.f32 %v2064_v58 }
 0x5f9   :  { %2221 = vpow2.f32 %v2065_v31 }
 0x5fa   :  { %2223 = vtanh.f32 %v1514_v60 }
 0x603   :  { %v2218_v59 = vpop.eup %2217 }
 0x604   :  { %v1524_v13 = vadd.f32 1.0, %v2218_v59  ;;  %v1543_v59 = vpop.permute.xlu1 %1542 }
 0x605   :  { %v2220_v32 = vpop.eup %2219  ;;  %vm1544_vm13 = vcmp.eq.s32.totalorder %v1543_v59, 1  ;;  %v1924_v59 = vld [vmem:[#allocation6 + $0x50] sm:$0xff] }
 0x606   :  { %2225 = vrcp.f32 %v1524_v13  ;;  %v1525_v33 = vadd.f32 1.0, %v2220_v32  ;;  %v2222_v34 = vpop.eup %2221  ;;  %v1727_v32 = vpop.permute.xlu0 %1726 }
 0x607   :  { %v2224_v37 = vpop.eup %2223  ;;  %v1526_v35 = vadd.f32 1.0, %v2222_v34  ;;  %vm1728_vm15 = vcmp.eq.s32.totalorder %v1727_v32, 1 }
 0x608   :  { %2227 = vrcp.f32 %v1525_v33 }
 0x609   :  { %2229 = vrcp.f32 %v1526_v35  ;;  %v1927_v35 = vld [vmem:[#allocation6 + $0x68] sm:$0xff] }
 0x613   :  { %v2226_v57 = vpop.eup %2225 }
 0x614   :  { %v1535_v14 = vmul.f32 %v2226_v57, %v2224_v37 }
 0x615   :  { %v2228_v58 = vpop.eup %2227 }
 0x616   :  { %v1534_v29 = vmul.f32 %v2228_v58, %v3342_v30  ;;  %v2230_v15 = vpop.eup %2229  ;;  %v1928_v58 = vld [vmem:[#allocation6 + $0x70] sm:$0xff] }
 0x618   :  { %v3421_v26 = vadd.f32 %v1535_v14, %v1534_v29  ;;  %v1929_v14 = vld [vmem:[#allocation6 + $0x78] sm:$0xff]  ;;  %v1926_v29 = vld [vmem:[#allocation6 + $0x60] sm:$0xff] }
 0x61a   :  { %2231 = vtanh.f32 %v3421_v26 }
 0x627   :  { %v2232_v27 = vpop.eup %2231 }
 0x628   :  { %v1538_v60 = vmul.f32 %v2232_v27, %v2230_v15  ;;  %v1923_v15 = vld [vmem:[#allocation6 + $0x48] sm:$0xff]  ;;  %v1922_v27 = vld [vmem:[#allocation6 + $0x40] sm:$0xff] }
 0x62a   :  { %v3425_v13 = vsel %vm1544_vm13, %v1538_v60, %v3346_v38  ;;  %1618 = vmatmul.mubr.f32.vlgmr.msra.gmra.mxu0 %v1538_v60  ;;  %1689 = vmatmul.mubr.f32.vlgmr.msra.gmra.mxu1 %v1538_v60  ;;  %v1921_v60 = vld [vmem:[#allocation6 + $0x38] sm:$0xff] }
 0x62b   :  { %1738 = vmatpush1.msra.mxu0 %v3066_v39  ;;  %1809 = vmatpush1.msra.mxu1 %v3069_v12  ;;  %v3820_v39 = vld [vmem:[#allocation38_spill] sm:$0xff]  ;;  %v3821_v12 = vld [vmem:[#allocation16_spill] sm:$0xff] }
 0x62c   :  { %1739 = vmatprep.subr.mxu0 %v3072_v40  ;;  %1810 = vmatprep.subr.mxu1 %v3075_v41  ;;  %v3822_v40 = vld [vmem:[#allocation17_spill] sm:$0xff]  ;;  %v3823_v41 = vld [vmem:[#allocation18_spill] sm:$0xff] }
 0x62d   :  { %1740 = vmatpush1.msra.mxu0 %v3078_v7  ;;  %1811 = vmatpush1.msra.mxu1 %v3081_v42  ;;  %v3824_v7 = vld [vmem:[#allocation19_spill] sm:$0xff]  ;;  %v3825_v42 = vld [vmem:[#allocation20_spill] sm:$0xff] }
 0x62e   :  { %1741 = vmatprep.subr.mxu0 %v3084_v43  ;;  %1812 = vmatprep.subr.mxu1 %v3087_v44  ;;  %v3826_v43 = vld [vmem:[#allocation21_spill] sm:$0xff]  ;;  %v3827_v44 = vld [vmem:[#allocation22_spill] sm:$0xff] }
 0x62f   :  { %1742 = vmatpush1.msra.mxu0 %v3090_v45  ;;  %1813 = vmatpush1.msra.mxu1 %v3093_v47  ;;  %v3828_v45 = vld [vmem:[#allocation23_spill] sm:$0xff]  ;;  %v3829_v47 = vld [vmem:[#allocation24_spill] sm:$0xff] }
 0x630   :  { %1743 = vmatprep.subr.mxu0 %v3096_v48  ;;  %1814 = vmatprep.subr.mxu1 %v3099_v49  ;;  %v3830_v48 = vld [vmem:[#allocation25_spill] sm:$0xff]  ;;  %v3831_v49 = vld [vmem:[#allocation27_spill] sm:$0xff] }
 0x631   :  { %1744 = vmatpush1.msra.mxu0 %v3102_v50  ;;  %1815 = vmatpush1.msra.mxu1 %v3105_v51  ;;  %v3832_v50 = vld [vmem:[#allocation28_spill] sm:$0xff]  ;;  %v3833_v51 = vld [vmem:[#allocation29_spill] sm:$0xff] }
 0x632   :  { %1745 = vmatprep.subr.mxu0 %v3108_v52  ;;  %1816 = vmatprep.subr.mxu1 %v3111_v53  ;;  %v3834_v52 = vld [vmem:[#allocation30_spill] sm:$0xff]  ;;  %v3835_v53 = vld [vmem:[#allocation31_spill] sm:$0xff] }
 0x633   :  { %1746 = vmatpush1.msra.mxu0 %v3114_v54  ;;  %1817 = vmatpush1.msra.mxu1 %v3117_v4  ;;  %v3836_v54 = vld [vmem:[#allocation32_spill] sm:$0xff]  ;;  %v3837_v4 = vmov 0.0  }
 0x634   :  { %1747 = vmatprep.subr.mxu0 %v3120_v55  ;;  %1818 = vmatprep.subr.mxu1 %v3123_v9  ;;  %v3838_v55 = vld [vmem:[#allocation33_spill] sm:$0xff]  ;;  %v3839_v9 = vld [vmem:[#allocation26_spill] sm:$0xff] }
 0x635   :  { %1748 = vmatpush1.msra.mxu0 %v3126_v0  ;;  %1819 = vmatpush1.msra.mxu1 %v3129_v2  ;;  %vm1907_vm14 = vcmp.eq.s32.totalorder %v3839_v9, 7  ;;  %v3840_v0 = vmov 0  }
 0x636   :  { %1749 = vmatprep.subr.mxu0 %v3132_v1  ;;  %1820 = vmatprep.subr.mxu1 %v3135_v46  ;;  %v1908_v2 = vsel %vm1907_vm14, 1, %v3840_v0  ;;  %v3841_v46 = vld [vmem:[#allocation55_spill] sm:$0xff]  ;;  %v3848_v0 = vld [vmem:[#allocation62_spill] sm:$0xff] }
 0x637   :  { %1750 = vmatpush1.msra.mxu0 %v3138_v11  ;;  %1821 = vmatpush1.msra.mxu1 %v3141_v8 }
 0x638   :  { %1751 = vmatprep.subr.mxu0 %v3144_v10  ;;  %1822 = vmatprep.subr.mxu1 %v3766_v62 }
 0x639   :  { %1752 = vmatpush1.msra.mxu0 %v3767_v3  ;;  %1823 = vmatpush1.msra.mxu1 %v3768_v16  ;;  %v3844_v16 = vld [vmem:[#allocation58_spill] sm:$0xff] }
 0x63a   :  { %1753 = vmatprep.subr.mxu0 %v3769_v17  ;;  %1824 = vmatprep.subr.mxu1 %v3770_v18 }
 0x63b   :  { %1754 = vmatpush1.msra.mxu0 %v3162_v63  ;;  %1825 = vmatpush1.msra.mxu1 %v3165_v5  ;;  %v3842_v5 = vld [vmem:[#allocation57_spill] sm:$0xff] }
 0x63c   :  { %1755 = vmatprep.subr.mxu0 %v3168_v28  ;;  %1826 = vmatprep.subr.mxu1 %v3171_v61 }
 0x63d   :  { %1756 = vmatpush1.msra.mxu0 %v3174_v19  ;;  %1827 = vmatpush1.msra.mxu1 %v3177_v6  ;;  %v3843_v6 = vld [vmem:[#allocation56_spill] sm:$0xff] }
 0x63e   :  { %1757 = vmatprep.subr.mxu0 %v3259_v20  ;;  %1828 = vmatprep.subr.mxu1 %v3262_v21 }
 0x63f   :  { %1758 = vmatpush1.msra.mxu0 %v3265_v22  ;;  %1829 = vmatpush1.msra.mxu1 %v3268_v23 }
 0x640   :  { %1759 = vmatprep.subr.mxu0 %v3271_v24  ;;  %1830 = vmatprep.subr.mxu1 %v3274_v25 }
 0x641   :  { %1760 = vmatpush1.msra.mxu0 %v3820_v39  ;;  %1831 = vmatpush1.msra.mxu1 %v3821_v12  ;;  %v1919_v39 = vld [vmem:[#allocation6 + $0x28] sm:$0xff]  ;;  %v1918_v12 = vld [vmem:[#allocation6 + $0x20] sm:$0xff] }
 0x642   :  { %1761 = vmatprep.subr.mxu0 %v3822_v40  ;;  %1832 = vmatprep.subr.mxu1 %v3823_v41  ;;  %v1917_v40 = vld [vmem:[#allocation6 + $0x18] sm:$0xff]  ;;  %v1916_v41 = vld [vmem:[#allocation6 + $0x10] sm:$0xff] }
 0x643   :  { %1762 = vmatpush1.msra.mxu0 %v3824_v7  ;;  %1833 = vmatpush1.msra.mxu1 %v3825_v42  ;;  %v1915_v7 = vld [vmem:[#allocation6 + $0x8] sm:$0xff]  ;;  %v1914_v42 = vld [vmem:[#allocation6] sm:$0xff] }
 0x644   :  { %1763 = vmatprep.subr.mxu0 %v3826_v43  ;;  %1834 = vmatprep.subr.mxu1 %v3827_v44  ;;  %v3845_v44 = vld [vmem:[#allocation59_spill] sm:$0xff] }
 0x645   :  { %1764 = vmatpush1.msra.mxu0 %v3828_v45  ;;  %1835 = vmatpush1.msra.mxu1 %v3829_v47 }
 0x646   :  { %1765 = vmatprep.subr.mxu0 %v3830_v48  ;;  %1836 = vmatprep.subr.mxu1 %v3831_v49  ;;  %v3846_v49 = vld [vmem:[#allocation61_spill] sm:$0xff] }
 0x647   :  { %1766 = vmatpush1.msra.mxu0 %v3832_v50  ;;  %1837 = vmatpush1.msra.mxu1 %v3833_v51 }
 0x648   :  { %1767 = vmatprep.subr.mxu0 %v3834_v52  ;;  %1838 = vmatprep.subr.mxu1 %v3835_v53  ;;  %v3847_v53 = vld [vmem:[#allocation60_spill] sm:$0xff] }
 0x649   :  { %1768 = vmatpush1.msra.mxu0 %v3836_v54  ;;  %1801 = vmatprep.mubr.f32.mxu0 %v3837_v4 }
 0x64a   :  { %1839 = vmatpush1.msra.mxu1 %v3838_v55  ;;  %1872 = vmatprep.mubr.f32.mxu1 %v3837_v4 }
 0x64b   :  { %2090 = vmatprep.subr.mxu0 %v3837_v4  ;;  %1910 = vperm.xlu1 %2136, %v1908_v2  }
 0x6ea   :  { %v1619_v1 = vpop.f32.mrf.mxu0  ;;  %v1690_v19 = vpop.f32.mrf.mxu1 }
 0x6eb   :  { %v1695_v11 = vadd.f32 %v1619_v1, %v3841_v46  ;;  %v1697_v63 = vadd.f32 %v1690_v19, %v3843_v6 }
 0x6ec   :  { %v1621_v8 = vpop.f32.mrf.mxu0  ;;  %v1692_v62 = vpop.f32.mrf.mxu1 }
 0x6ed   :  { %v2066_v10 = vmul.f32 -1.442695, %v1695_v11  ;;  %v1696_v28 = vadd.f32 %v1621_v8, %v3842_v5  ;;  %v2068_v3 = vmul.f32 -1.442695, %v1697_v63  ;;  %v1698_v17 = vadd.f32 %v1692_v62, %v3844_v16 }
 0x6ef   :  { %2233 = vpow2.f32 %v2066_v10  ;;  %v2067_v61 = vmul.f32 -1.442695, %v1696_v28 }
 0x6f1   :  { %2235 = vpow2.f32 %v2067_v61 }
 0x6f2   :  { %2237 = vpow2.f32 %v2068_v3  ;;  %v1911_v3 = vpop.permute.xlu1 %1910 }
 0x6f3   :  { %2239 = vtanh.f32 %v1698_v17  ;;  %vm1912_vm1 = vcmp.eq.s32.totalorder %v1911_v3, 1 }
 0x6fc   :  { %v2234_v18 = vpop.eup %2233 }
 0x6fd   :  { %v1708_v20 = vadd.f32 1.0, %v2234_v18 }
 0x6fe   :  { %v2236_v21 = vpop.eup %2235 }
 0x6ff   :  { %2241 = vrcp.f32 %v1708_v20  ;;  %v1709_v22 = vadd.f32 1.0, %v2236_v21  ;;  %v2238_v23 = vpop.eup %2237  ;;  %v2072_v20 = vld [vmem:[%s3539_s6] ss:$0 sm:$0xff] }
 0x700   :  { %v2240_v24 = vpop.eup %2239  ;;  %v1710_v36 = vadd.f32 1.0, %v2238_v23 }
 0x701   :  { %2243 = vrcp.f32 %v1709_v22 }
 0x702   :  { %2245 = vrcp.f32 %v1710_v36 }
 0x70c   :  { %v2242_v25 = vpop.eup %2241 }
 0x70d   :  { %v1719_v30 = vmul.f32 %v2242_v25, %v2240_v24 }
 0x70e   :  { %v2244_v38 = vpop.eup %2243 }
 0x70f   :  { %v1718_v56 = vmul.f32 %v2244_v38, %v3421_v26  ;;  %v2246_v33 = vpop.eup %2245  ;;  %v1925_v26 = vld [vmem:[#allocation6 + $0x58] sm:$0xff] }
 0x711   :  { %v3499_v31 = vadd.f32 %v1719_v30, %v1718_v56 }
 0x713   :  { %2247 = vtanh.f32 %v3499_v31 }
 0x720   :  { %v2248_v34 = vpop.eup %2247 }
 0x721   :  { %v1722_v37 = vmul.f32 %v2248_v34, %v2246_v33 }
 0x723   :  { %v3503_v57 = vsel %vm1728_vm15, %v1722_v37, %v3425_v13  ;;  %1802 = vmatmul.mubr.f32.vlgmr.msra.gmra.mxu0 %v1722_v37  ;;  %1873 = vmatmul.mubr.f32.vlgmr.msra.gmra.mxu1 %v1722_v37  ;;  %v1920_v13 = vld [vmem:[#allocation6 + $0x30] sm:$0xff] }
 0x724   :  { %2091 = vmatpush3.msra.mxu0 %v1929_v14  ;;  %2122 = vmatprep.mubr.msk.f32.mxu0 %vm2403_vm0, %v3837_v4 }
 0x725   :  { %2092 = vmatprep.subr.mxu0 %v3837_v4 }
 0x726   :  { %2093 = vmatpush3.msra.mxu0 %v1928_v58 }
 0x727   :  { %2094 = vmatprep.subr.mxu0 %v3837_v4 }
 0x728   :  { %2095 = vmatpush3.msra.mxu0 %v1927_v35 }
 0x729   :  { %2096 = vmatprep.subr.mxu0 %v3837_v4 }
 0x72a   :  { %2097 = vmatpush3.msra.mxu0 %v1926_v29 }
 0x72b   :  { %2098 = vmatprep.subr.mxu0 %v3837_v4 }
 0x72c   :  { %2099 = vmatpush3.msra.mxu0 %v1925_v26 }
 0x72d   :  { %2100 = vmatprep.subr.mxu0 %v3837_v4 }
 0x72e   :  { %2101 = vmatpush3.msra.mxu0 %v1924_v59 }
 0x72f   :  { %2102 = vmatprep.subr.mxu0 %v3837_v4 }
 0x730   :  { %2103 = vmatpush3.msra.mxu0 %v1923_v15 }
 0x731   :  { %2104 = vmatprep.subr.mxu0 %v3837_v4 }
 0x732   :  { %2105 = vmatpush3.msra.mxu0 %v1922_v27 }
 0x733   :  { %2106 = vmatprep.subr.mxu0 %v3837_v4 }
 0x734   :  { %2107 = vmatpush3.msra.mxu0 %v1921_v60 }
 0x735   :  { %2108 = vmatprep.subr.mxu0 %v3837_v4 }
 0x736   :  { %2109 = vmatpush3.msra.mxu0 %v1920_v13 }
 0x737   :  { %2110 = vmatprep.subr.mxu0 %v3837_v4 }
 0x738   :  { %2111 = vmatpush3.msra.mxu0 %v1919_v39 }
 0x739   :  { %2112 = vmatprep.subr.mxu0 %v3837_v4 }
 0x73a   :  { %2113 = vmatpush3.msra.mxu0 %v1918_v12 }
 0x73b   :  { %2114 = vmatprep.subr.mxu0 %v3837_v4 }
 0x73c   :  { %2115 = vmatpush3.msra.mxu0 %v1917_v40 }
 0x73d   :  { %2116 = vmatprep.subr.mxu0 %v3837_v4 }
 0x73e   :  { %2117 = vmatpush3.msra.mxu0 %v1916_v41 }
 0x73f   :  { %2118 = vmatprep.subr.mxu0 %v3837_v4 }
 0x740   :  { %2119 = vmatpush3.msra.mxu0 %v1915_v7 }
 0x741   :  { %2120 = vmatprep.subr.mxu0 %v3837_v4 }
 0x742   :  { %2121 = vmatpush3.msra.mxu0 %v1914_v42 }
 0x7e3   :  { %v1803_v43 = vpop.f32.mrf.mxu0  ;;  %v1874_v52 = vpop.f32.mrf.mxu1 }
 0x7e4   :  { %v1879_v45 = vadd.f32 %v1803_v43, %v3845_v44  ;;  %v1881_v54 = vadd.f32 %v1874_v52, %v3847_v53 }
 0x7e5   :  { %v1805_v47 = vpop.f32.mrf.mxu0  ;;  %v1876_v55 = vpop.f32.mrf.mxu1 }
 0x7e6   :  { %v2069_v48 = vmul.f32 -1.442695, %v1879_v45  ;;  %v1880_v50 = vadd.f32 %v1805_v47, %v3846_v49  ;;  %v2071_v9 = vmul.f32 -1.442695, %v1881_v54  ;;  %v1882_v2 = vadd.f32 %v1876_v55, %v3848_v0 }
 0x7e8   :  { %2249 = vpow2.f32 %v2069_v48  ;;  %v2070_v51 = vmul.f32 -1.442695, %v1880_v50 }
 0x7ea   :  { %2251 = vpow2.f32 %v2070_v51 }
 0x7eb   :  { %2253 = vpow2.f32 %v2071_v9 }
 0x7ec   :  { %2255 = vtanh.f32 %v1882_v2 }
 0x7f5   :  { %v2250_v1 = vpop.eup %2249 }
 0x7f6   :  { %v1892_v4 = vadd.f32 1.0, %v2250_v1 }
 0x7f7   :  { %v2252_v46 = vpop.eup %2251 }
 0x7f8   :  { %2257 = vrcp.f32 %v1892_v4  ;;  %v1893_v11 = vadd.f32 1.0, %v2252_v46  ;;  %v2254_v8 = vpop.eup %2253 }
 0x7f9   :  { %v2256_v10 = vpop.eup %2255  ;;  %v1894_v19 = vadd.f32 1.0, %v2254_v8 }
 0x7fa   :  { %2259 = vrcp.f32 %v1893_v11 }
 0x7fb   :  { %2261 = vrcp.f32 %v1894_v19 }
 0x805   :  { %v2258_v5 = vpop.eup %2257 }
 0x806   :  { %v1903_v28 = vmul.f32 %v2258_v5, %v2256_v10 }
 0x807   :  { %v2260_v61 = vpop.eup %2259 }
 0x808   :  { %v1902_v6 = vmul.f32 %v2260_v61, %v3499_v31  ;;  %v2262_v62 = vpop.eup %2261 }
 0x80a   :  { %v1904_v63 = vadd.f32 %v1903_v28, %v1902_v6 }
 0x80c   :  { %2263 = vtanh.f32 %v1904_v63 }
 0x819   :  { %v2264_v16 = vpop.eup %2263 }
 0x81a   :  { %v1906_v17 = vmul.f32 %v2264_v16, %v2262_v62 }
 0x81c   :  { %v1913_v18 = vsel %vm1912_vm1, %v1906_v17, %v3503_v57 }
 0x81d   :  { %2123 = vmatmul.mubr.f32.vlgmr.msra.gmra.mxu0 %v1913_v18 }
 0x8dd   :  { %v2003_v21 = vpop.f32.mrf.mxu0 }
 0x8de   :  { %v2004_v22 = vadd.f32 %v2072_v20, %v2003_v21 }
 0x8df   :  { %v2124_v23 = vpop.f32.mrf.mxu0 }
 0x8e0   :  { %2007 = vst [vmem:[#allocation8] sm:$0xff] %v2004_v22 }
 0x8e1   :  { %2380 = shalt.err (!%p2377_p0)
}
 0x8e2   :  { %2017 = dma.vmem_to_hbm [thread:$0]  %s2015_s23, 128, %s3540_s7, [#allocation5]  }
 0x8e3   :  { %2393 = dma.done.wait [#allocation5], 128  }
 0x8e4   :  { %2394 = vsyncadd [#allocation5], 4294967168 }
 0x8e5   :  { %2021 = vsyncpa [#allocation4], 1 }
 0x8e6   :  { %2022 = vsyncpa [#allocation7], 1 }
 0x8e7   :  { %2023 = vsyncpa [#allocation5], 1 }

</bundles_post_ra>
